<compile_context>
chip_gen: v7x
topology: tpu7x:2x2x1
jax: 0.10.0
libtpu: 0.0.40
codegen_flags: <defaults>
</compile_context>

<pallas_src>
import functools

import jax
import jax.numpy as jnp
from jax import lax
from jax.experimental import pallas as pl
from jax.experimental.pallas import tpu as pltpu


def _split_gates(gates, H):
    """PyTorch LSTM gate order: i, f, g, o (static lane slices of [TB, 4H])."""
    i = jax.nn.sigmoid(gates[:, 0 * H:1 * H])
    f = jax.nn.sigmoid(gates[:, 1 * H:2 * H])
    g = jnp.tanh(gates[:, 2 * H:3 * H])
    o = jax.nn.sigmoid(gates[:, 3 * H:4 * H])
    return i, f, g, o


def ctc_kernel(x_ref, wih0_ref, whh0_ref, b0_ref, wih1_ref, whh1_ref, b1_ref,
               out_ref,
               g0_ref, p_ref, h0_ref, c0_ref, h1_ref, c1_ref,
               *, mm_dtype):
    TB, H = h0_ref.shape                 # batch rows per group, hidden size
    TT = g0_ref.shape[0] // TB           # time steps in this chunk
    t_blk = pl.program_id(1)

    # ---- first time-chunk of this batch group: zero LSTM state + output ----
    @pl.when(t_blk == 0)
    def _init():
        h0_ref[...] = jnp.zeros_like(h0_ref)
        c0_ref[...] = jnp.zeros_like(c0_ref)
        h1_ref[...] = jnp.zeros_like(h1_ref)
        c1_ref[...] = jnp.zeros_like(c1_ref)
        out_ref[...] = jnp.zeros_like(out_ref)

    # Weights: loaded once per grid step from VMEM-resident blocks (constant index_map).
    # Recurrent matmuls stay f32: they are tiny and latency-bound, and f32 keeps the
    # VPU/EUP elementwise path exact (v5e has no bf16 VPU/EUP anyway).
    whh0 = whh0_ref[...]                 # [H, 4H]
    wih1 = wih1_ref[...]                 # [H, 4H]
    whh1 = whh1_ref[...]                 # [H, 4H]
    b1 = b1_ref[...]                     # [1, 4H]

    # ---- hoisted layer-0 input projection: ONE MXU matmul per chunk --------
    x_blk = x_ref[...]                   # [TT*TB, D] f32 (row t*TB + j == (time t, batch j))
    g0_ref[...] = (
        jnp.dot(x_blk.astype(mm_dtype), wih0_ref[...].astype(mm_dtype),
                preferred_element_type=jnp.float32)
        + b0_ref[...]
    )

    # ---- serial recurrence over the time chunk ------------------------------
    def step(tt, carry):
        h0, c0, h1, c1 = carry
        row = pl.multiple_of(tt * TB, TB)
        g0_t = g0_ref[pl.ds(row, TB), :]                       # [TB, 4H] (precomputed)

        # layer 0: only the recurrent term is on the per-step critical path.
        gates0 = g0_t + jnp.dot(h0, whh0, preferred_element_type=jnp.float32)
        i0, f0, g0g, o0 = _split_gates(gates0, H)
        c0 = f0 * c0 + i0 * g0g
        h0 = o0 * jnp.tanh(c0)

        # layer 1
        gates1 = (b1
                  + jnp.dot(h0, wih1, preferred_element_type=jnp.float32)
                  + jnp.dot(h1, whh1, preferred_element_type=jnp.float32))
        i1, f1, g1g, o1 = _split_gates(gates1, H)
        c1 = f1 * c1 + i1 * g1g
        h1 = o1 * jnp.tanh(c1)

        # softmax over the position-incl.-blank axis; denominator on the EUP.
        m = jnp.max(h1, axis=-1, keepdims=True)
        e = jnp.exp(h1 - m)
        p = e * pl.reciprocal(jnp.sum(e, axis=-1, keepdims=True), approx=True)
        p_ref[pl.ds(row, TB), :] = p                            # stage full row (blank kept)
        return h0, c0, h1, c1

    carry0 = (h0_ref[...], c0_ref[...], h1_ref[...], c1_ref[...])
    unroll = True if TT <= 16 else 8
    h0, c0, h1, c1 = lax.fori_loop(0, TT, step, carry0, unroll=unroll)
    h0_ref[...] = h0
    c0_ref[...] = c0
    h1_ref[...] = h1
    c1_ref[...] = c1

    # ---- chunk-level bmm on the MXU: out[j] += (P_j[:, 1:])^T @ X_j ----------
    # (replaces the per-step rank-1 VPU accumulation of the previous version)
    for j in range(TB):
        if TB == 1:
            pj = p_ref[...]                                     # [TT, H]
            xj = x_ref[...]                                     # [TT, D]
        else:
            pj = p_ref[pl.ds(j, TT, stride=TB), :]              # [TT, H]
            xj = x_ref[pl.ds(j, TT, stride=TB), :]              # [TT, D]
        pj_t = jnp.transpose(pj)[1:, :]                         # drop blank -> [S, TT]
        out_ref[j] = out_ref[j] + jnp.dot(
            pj_t.astype(mm_dtype), xj.astype(mm_dtype),
            preferred_element_type=jnp.float32)


def ctc_module_forward(x, params, out_seq_len, *, block_b=None, block_t=None,
                       use_bf16_matmul=False):
    """x: [B, T, D] float32.  Returns pseudo_aligned_out: [B, out_seq_len, D]."""
    B, T, D = x.shape
    H = out_seq_len + 1
    S = out_seq_len
    wih0, whh0, b0, wih1, whh1, b1 = params

    if block_b is None:
        block_b = B          # single-core default (batched recurrence); use B//2 on v7x
    if block_t is None:
        block_t = T
    assert B % block_b == 0 and T % block_t == 0
    assert (block_t * block_b) % 8 == 0 or block_t == T, (
        "time-chunk rows must be a multiple of 8 (or the full time extent)")
    nb, nt = B // block_b, T // block_t
    TB, TT = block_b, block_t

    # Regroup x so each batch group is a time-major 2-D slab:
    # row (t*TB + j) of group g is x[g*TB + j, t, :].
    xg = x.reshape(nb, TB, T, D).transpose(0, 2, 1, 3).reshape(nb, T * TB, D)

    # Pre-transpose the PyTorch-convention weights once (drop per-step .T in-kernel).
    wih0_t, whh0_t = wih0.T, whh0.T          # [D, 4H], [H, 4H]
    wih1_t, whh1_t = wih1.T, whh1.T          # [H, 4H], [H, 4H]

    mm_dtype = jnp.bfloat16 if use_bf16_matmul else jnp.float32
    kernel = functools.partial(ctc_kernel, mm_dtype=mm_dtype)

    def weight_spec(shp):
        return pl.BlockSpec(shp, lambda g, t: (0, 0))   # constant -> DMA'd once, resident

    return pl.pallas_call(
        kernel,
        out_shape=jax.ShapeDtypeStruct((B, S, D), jnp.float32),
        grid_spec=pltpu.PrefetchScalarGridSpec(
            num_scalar_prefetch=0,
            grid=(nb, nt),
            in_specs=[
                pl.BlockSpec((None, TT * TB, D), lambda g, t: (g, t, 0)),
                weight_spec((D, 4 * H)),
                weight_spec((H, 4 * H)),
                weight_spec((1, 4 * H)),
                weight_spec((H, 4 * H)),
                weight_spec((H, 4 * H)),
                weight_spec((1, 4 * H)),
            ],
            out_specs=pl.BlockSpec((TB, S, D), lambda g, t: (g, 0, 0)),
            scratch_shapes=[
                pltpu.VMEM((TT * TB, 4 * H), jnp.float32),   # hoisted layer-0 input gates
                pltpu.VMEM((TT * TB, H), jnp.float32),       # per-step softmax rows
                pltpu.VMEM((TB, H), jnp.float32),            # h0
                pltpu.VMEM((TB, H), jnp.float32),            # c0
                pltpu.VMEM((TB, H), jnp.float32),            # h1
                pltpu.VMEM((TB, H), jnp.float32),            # c1
            ],
        ),
        compiler_params=pltpu.CompilerParams(
            dimension_semantics=("parallel", "arbitrary")),
    )(xg, wih0_t, whh0_t, b0, wih1_t, whh1_t, b1)


def init_params(key, in_dim, out_seq_len):
    """Deterministic synthetic init mimicking PyTorch LSTM param shapes."""
    H = out_seq_len + 1
    k = 1.0 / jnp.sqrt(jnp.float32(H))
    ks = jax.random.split(key, 8)
    u = lambda kk, shp: jax.random.uniform(kk, shp, jnp.float32, -k, k)
    wih0 = u(ks[0], (4 * H, in_dim))
    whh0 = u(ks[1], (4 * H, H))
    b0 = u(ks[2], (1, 4 * H)) + u(ks[3], (1, 4 * H))     # b_ih + b_hh combined
    wih1 = u(ks[4], (4 * H, H))
    whh1 = u(ks[5], (4 * H, H))
    b1 = u(ks[6], (1, 4 * H)) + u(ks[7], (1, 4 * H))
    return wih0, whh0, b0, wih1, whh1, b1


def ctc_reference(x, params, out_seq_len):
    """Pure-JAX reference of the PyTorch forward, for the correctness check."""
    wih0, whh0, b0, wih1, whh1, b1 = params
    B, T, D = x.shape
    H = out_seq_len + 1

    def cell(x_t, h, c, wih, whh, b):
        g = x_t @ wih.T + h @ whh.T + b
        i = jax.nn.sigmoid(g[:, 0 * H:1 * H])
        f = jax.nn.sigmoid(g[:, 1 * H:2 * H])
        gg = jnp.tanh(g[:, 2 * H:3 * H])
        o = jax.nn.sigmoid(g[:, 3 * H:4 * H])
        c = f * c + i * gg
        return o * jnp.tanh(c), c

    h0 = c0 = h1 = c1 = jnp.zeros((B, H), jnp.float32)
    outs = []
    for t in range(T):
        x_t = x[:, t, :]
        h0, c0 = cell(x_t, h0, c0, wih0, whh0, b0)
        h1, c1 = cell(h0, h1, c1, wih1, whh1, b1)
        outs.append(h1)
    lstm_out = jnp.stack(outs, axis=1)                       # [B, T, H]
    prob = jax.nn.softmax(lstm_out, axis=2)[:, :, 1:]        # [B, T, S]
    return jnp.einsum("bts,btd->bsd", prob, x)               # bmm(prob^T, x)


if __name__ == "__main__":
    B, T, in_dim, out_seq_len = 2, 16, 32, 7   # hidden size H = out_seq_len + 1 = 8

    key = jax.random.PRNGKey(0)
    kx, kp = jax.random.split(key)
    x = jax.random.normal(kx, (B, T, in_dim), jnp.float32)
    params = init_params(kp, in_dim, out_seq_len)

    # block_t=8 -> two time chunks: exercises the cross-chunk state carry and the
    # output accumulation across the "arbitrary" time axis.
    out = ctc_module_forward(x, params, out_seq_len, block_t=8)
    out = jax.block_until_ready(out)

    ref = ctc_reference(x, params, out_seq_len)
    assert out.shape == (B, out_seq_len, in_dim)
    err = float(jnp.max(jnp.abs(out - ref)))
    # Tolerance accommodates the approximate EUP reciprocal in the in-kernel softmax;
    # everything else is exact f32 (use_bf16_matmul is off in this demo).
    assert jnp.allclose(out, ref, atol=1e-2, rtol=1e-2), f"mismatch vs reference: {err}"

    print("KERNEL_OK")
</pallas_src>

<mosaic_0001>
module attributes {stable_mosaic.version = 11 : i64} {
  func.func @ctc_kernel(%arg0: i32, %arg1: i32, %arg2: memref<1x16x32xf32, #tpu.memory_space<vmem>>, %arg3: memref<32x32xf32, #tpu.memory_space<vmem>>, %arg4: memref<8x32xf32, #tpu.memory_space<vmem>>, %arg5: memref<1x32xf32, #tpu.memory_space<vmem>>, %arg6: memref<8x32xf32, #tpu.memory_space<vmem>>, %arg7: memref<8x32xf32, #tpu.memory_space<vmem>>, %arg8: memref<1x32xf32, #tpu.memory_space<vmem>>, %arg9: memref<2x7x32xf32, #tpu.memory_space<vmem>>, %arg10: memref<16x32xf32, #tpu.memory_space<vmem>>, %arg11: memref<16x8xf32, #tpu.memory_space<vmem>>, %arg12: memref<2x8xf32, #tpu.memory_space<vmem>>, %arg13: memref<2x8xf32, #tpu.memory_space<vmem>>, %arg14: memref<2x8xf32, #tpu.memory_space<vmem>>, %arg15: memref<2x8xf32, #tpu.memory_space<vmem>>) attributes {dimension_semantics = [#tpu.dimension_semantics<parallel>, #tpu.dimension_semantics<arbitrary>], iteration_bounds = array<i64: 1, 2>, scalar_prefetch = 0 : i64, scratch_operands = 6 : i64, tpu.core_type = #tpu.core_type<tc>, window_params = [{transform_indices = @transform_0, window_bounds = array<i64: 1, 16, 32>}, {pipeline_mode = #tpu.pipeline_mode<synchronous>, transform_indices = @transform_1, window_bounds = array<i64: 32, 32>}, {pipeline_mode = #tpu.pipeline_mode<synchronous>, transform_indices = @transform_2, window_bounds = array<i64: 8, 32>}, {pipeline_mode = #tpu.pipeline_mode<synchronous>, transform_indices = @transform_3, window_bounds = array<i64: 1, 32>}, {pipeline_mode = #tpu.pipeline_mode<synchronous>, transform_indices = @transform_4, window_bounds = array<i64: 8, 32>}, {pipeline_mode = #tpu.pipeline_mode<synchronous>, transform_indices = @transform_5, window_bounds = array<i64: 8, 32>}, {pipeline_mode = #tpu.pipeline_mode<synchronous>, transform_indices = @transform_6, window_bounds = array<i64: 1, 32>}, {transform_indices = @transform_7, window_bounds = array<i64: 2, 7, 32>}]} {
    %c0_i32 = arith.constant 0 : i32
    %0 = arith.cmpi eq, %arg1, %c0_i32 : i32
    %1 = arith.extui %0 : i1 to i32
    %c0_i32_0 = arith.constant 0 : i32
    %2 = arith.cmpi ne, %1, %c0_i32_0 : i32
    scf.if %2 {
      %cst_169 = arith.constant 0.000000e+00 : f32
      %631 = vector.broadcast %cst_169 : f32 to vector<2x8xf32>
      %c0_170 = arith.constant 0 : index
      %c0_171 = arith.constant 0 : index
      %632 = vector.load %arg12[%c0_170, %c0_171] : memref<2x8xf32, #tpu.memory_space<vmem>>, vector<2x8xf32>
      tpu.vector_store %arg12[%c0_170, %c0_171], %631 {strides = array<i32>} : memref<2x8xf32, #tpu.memory_space<vmem>>, vector<2x8xf32>,
      %cst_172 = arith.constant 0.000000e+00 : f32
      %633 = vector.broadcast %cst_172 : f32 to vector<2x8xf32>
      %c0_173 = arith.constant 0 : index
      %c0_174 = arith.constant 0 : index
      %634 = vector.load %arg13[%c0_173, %c0_174] : memref<2x8xf32, #tpu.memory_space<vmem>>, vector<2x8xf32>
      tpu.vector_store %arg13[%c0_173, %c0_174], %633 {strides = array<i32>} : memref<2x8xf32, #tpu.memory_space<vmem>>, vector<2x8xf32>,
      %cst_175 = arith.constant 0.000000e+00 : f32
      %635 = vector.broadcast %cst_175 : f32 to vector<2x8xf32>
      %c0_176 = arith.constant 0 : index
      %c0_177 = arith.constant 0 : index
      %636 = vector.load %arg14[%c0_176, %c0_177] : memref<2x8xf32, #tpu.memory_space<vmem>>, vector<2x8xf32>
      tpu.vector_store %arg14[%c0_176, %c0_177], %635 {strides = array<i32>} : memref<2x8xf32, #tpu.memory_space<vmem>>, vector<2x8xf32>,
      %cst_178 = arith.constant 0.000000e+00 : f32
      %637 = vector.broadcast %cst_178 : f32 to vector<2x8xf32>
      %c0_179 = arith.constant 0 : index
      %c0_180 = arith.constant 0 : index
      %638 = vector.load %arg15[%c0_179, %c0_180] : memref<2x8xf32, #tpu.memory_space<vmem>>, vector<2x8xf32>
      tpu.vector_store %arg15[%c0_179, %c0_180], %637 {strides = array<i32>} : memref<2x8xf32, #tpu.memory_space<vmem>>, vector<2x8xf32>,
      %cst_181 = arith.constant 0.000000e+00 : f32
      %639 = vector.broadcast %cst_181 : f32 to vector<2x7x32xf32>
      %c0_182 = arith.constant 0 : index
      %c0_183 = arith.constant 0 : index
      %c0_184 = arith.constant 0 : index
      %640 = vector.load %arg9[%c0_182, %c0_183, %c0_184] : memref<2x7x32xf32, #tpu.memory_space<vmem>>, vector<2x7x32xf32>
      tpu.vector_store %arg9[%c0_182, %c0_183, %c0_184], %639 {strides = array<i32>} : memref<2x7x32xf32, #tpu.memory_space<vmem>>, vector<2x7x32xf32>,
    } else {
    }
    %c0 = arith.constant 0 : index
    %c0_1 = arith.constant 0 : index
    %3 = vector.load %arg4[%c0, %c0_1] : memref<8x32xf32, #tpu.memory_space<vmem>>, vector<8x32xf32>
    %c0_2 = arith.constant 0 : index
    %c0_3 = arith.constant 0 : index
    %4 = vector.load %arg6[%c0_2, %c0_3] : memref<8x32xf32, #tpu.memory_space<vmem>>, vector<8x32xf32>
    %c0_4 = arith.constant 0 : index
    %c0_5 = arith.constant 0 : index
    %5 = vector.load %arg7[%c0_4, %c0_5] : memref<8x32xf32, #tpu.memory_space<vmem>>, vector<8x32xf32>
    %c0_6 = arith.constant 0 : index
    %c0_7 = arith.constant 0 : index
    %6 = vector.load %arg8[%c0_6, %c0_7] : memref<1x32xf32, #tpu.memory_space<vmem>>, vector<1x32xf32>
    %c0_8 = arith.constant 0 : index
    %c0_9 = arith.constant 0 : index
    %c0_10 = arith.constant 0 : index
    %7 = vector.load %arg2[%c0_8, %c0_9, %c0_10] : memref<1x16x32xf32, #tpu.memory_space<vmem>>, vector<1x16x32xf32>
    %8 = vector.shape_cast %7 : vector<1x16x32xf32> to vector<16x32xf32>
    %c0_11 = arith.constant 0 : index
    %c0_12 = arith.constant 0 : index
    %9 = vector.load %arg3[%c0_11, %c0_12] : memref<32x32xf32, #tpu.memory_space<vmem>>, vector<32x32xf32>
    %cst = arith.constant dense<0.000000e+00> : vector<16x32xf32>
    %10 = tpu.matmul %8, %9, %cst {dimension_numbers = #tpu.dot_dimension_numbers<[1], [0], [0], [1], [0, 0, 1, 1], [], []>} : vector<16x32xf32>, vector<32x32xf32>, vector<16x32xf32> -> vector<16x32xf32>
    %c0_13 = arith.constant 0 : index
    %c0_14 = arith.constant 0 : index
    %11 = vector.load %arg5[%c0_13, %c0_14] : memref<1x32xf32, #tpu.memory_space<vmem>>, vector<1x32xf32>
    %12 = vector.broadcast %11 : vector<1x32xf32> to vector<16x32xf32>
    %13 = arith.addf %10, %12 : vector<16x32xf32>
    %c0_15 = arith.constant 0 : index
    %c0_16 = arith.constant 0 : index
    %14 = vector.load %arg10[%c0_15, %c0_16] : memref<16x32xf32, #tpu.memory_space<vmem>>, vector<16x32xf32>
    tpu.vector_store %arg10[%c0_15, %c0_16], %13 {strides = array<i32>} : memref<16x32xf32, #tpu.memory_space<vmem>>, vector<16x32xf32>,
    %c0_17 = arith.constant 0 : index
    %c0_18 = arith.constant 0 : index
    %15 = vector.load %arg12[%c0_17, %c0_18] : memref<2x8xf32, #tpu.memory_space<vmem>>, vector<2x8xf32>
    %c0_19 = arith.constant 0 : index
    %c0_20 = arith.constant 0 : index
    %16 = vector.load %arg13[%c0_19, %c0_20] : memref<2x8xf32, #tpu.memory_space<vmem>>, vector<2x8xf32>
    %c0_21 = arith.constant 0 : index
    %c0_22 = arith.constant 0 : index
    %17 = vector.load %arg14[%c0_21, %c0_22] : memref<2x8xf32, #tpu.memory_space<vmem>>, vector<2x8xf32>
    %c0_23 = arith.constant 0 : index
    %c0_24 = arith.constant 0 : index
    %18 = vector.load %arg15[%c0_23, %c0_24] : memref<2x8xf32, #tpu.memory_space<vmem>>, vector<2x8xf32>
    %c0_i32_25 = arith.constant 0 : i32
    %c2_i32 = arith.constant 2 : i32
    %19 = arith.muli %c0_i32_25, %c2_i32 : i32
    %20 = tpu.assume_multiple %19, 2 : i32
    %21 = arith.index_cast %20 : i32 to index
    %c0_26 = arith.constant 0 : index
    %22 = vector.load %arg10[%21, %c0_26] : memref<16x32xf32, #tpu.memory_space<vmem>>, vector<2x32xf32>
    %cst_27 = arith.constant dense<0.000000e+00> : vector<2x32xf32>
    %23 = tpu.matmul %15, %3, %cst_27 {dimension_numbers = #tpu.dot_dimension_numbers<[1], [0], [0], [1], [0, 0, 1, 1], [], []>} : vector<2x8xf32>, vector<8x32xf32>, vector<2x32xf32> -> vector<2x32xf32>
    %24 = arith.addf %22, %23 : vector<2x32xf32>
    %25 = vector.extract_strided_slice %24 {offsets = [0, 0], sizes = [2, 8], strides = [1, 1]} : vector<2x32xf32> to vector<2x8xf32>
    %26 = arith.negf %25 : vector<2x8xf32>
    %27 = math.exp %26 : vector<2x8xf32>
    %cst_28 = arith.constant 1.000000e+00 : f32
    %28 = vector.broadcast %cst_28 : f32 to vector<2x8xf32>
    %29 = arith.addf %28, %27 : vector<2x8xf32>
    %30 = arith.divf %28, %29 : vector<2x8xf32>
    %31 = vector.extract_strided_slice %24 {offsets = [0, 8], sizes = [2, 8], strides = [1, 1]} : vector<2x32xf32> to vector<2x8xf32>
    %32 = arith.negf %31 : vector<2x8xf32>
    %33 = math.exp %32 : vector<2x8xf32>
    %cst_29 = arith.constant 1.000000e+00 : f32
    %34 = vector.broadcast %cst_29 : f32 to vector<2x8xf32>
    %35 = arith.addf %34, %33 : vector<2x8xf32>
    %36 = arith.divf %34, %35 : vector<2x8xf32>
    %37 = vector.extract_strided_slice %24 {offsets = [0, 16], sizes = [2, 8], strides = [1, 1]} : vector<2x32xf32> to vector<2x8xf32>
    %38 = math.tanh %37 : vector<2x8xf32>
    %39 = vector.extract_strided_slice %24 {offsets = [0, 24], sizes = [2, 8], strides = [1, 1]} : vector<2x32xf32> to vector<2x8xf32>
    %40 = arith.negf %39 : vector<2x8xf32>
    %41 = math.exp %40 : vector<2x8xf32>
    %cst_30 = arith.constant 1.000000e+00 : f32
    %42 = vector.broadcast %cst_30 : f32 to vector<2x8xf32>
    %43 = arith.addf %42, %41 : vector<2x8xf32>
    %44 = arith.divf %42, %43 : vector<2x8xf32>
    %45 = arith.mulf %36, %16 : vector<2x8xf32>
    %46 = arith.mulf %30, %38 : vector<2x8xf32>
    %47 = arith.addf %45, %46 : vector<2x8xf32>
    %48 = math.tanh %47 : vector<2x8xf32>
    %49 = arith.mulf %44, %48 : vector<2x8xf32>
    %cst_31 = arith.constant dense<0.000000e+00> : vector<2x32xf32>
    %50 = tpu.matmul %49, %4, %cst_31 {dimension_numbers = #tpu.dot_dimension_numbers<[1], [0], [0], [1], [0, 0, 1, 1], [], []>} : vector<2x8xf32>, vector<8x32xf32>, vector<2x32xf32> -> vector<2x32xf32>
    %51 = vector.broadcast %6 : vector<1x32xf32> to vector<2x32xf32>
    %52 = arith.addf %51, %50 : vector<2x32xf32>
    %cst_32 = arith.constant dense<0.000000e+00> : vector<2x32xf32>
    %53 = tpu.matmul %17, %5, %cst_32 {dimension_numbers = #tpu.dot_dimension_numbers<[1], [0], [0], [1], [0, 0, 1, 1], [], []>} : vector<2x8xf32>, vector<8x32xf32>, vector<2x32xf32> -> vector<2x32xf32>
    %54 = arith.addf %52, %53 : vector<2x32xf32>
    %55 = vector.extract_strided_slice %54 {offsets = [0, 0], sizes = [2, 8], strides = [1, 1]} : vector<2x32xf32> to vector<2x8xf32>
    %56 = arith.negf %55 : vector<2x8xf32>
    %57 = math.exp %56 : vector<2x8xf32>
    %cst_33 = arith.constant 1.000000e+00 : f32
    %58 = vector.broadcast %cst_33 : f32 to vector<2x8xf32>
    %59 = arith.addf %58, %57 : vector<2x8xf32>
    %60 = arith.divf %58, %59 : vector<2x8xf32>
    %61 = vector.extract_strided_slice %54 {offsets = [0, 8], sizes = [2, 8], strides = [1, 1]} : vector<2x32xf32> to vector<2x8xf32>
    %62 = arith.negf %61 : vector<2x8xf32>
    %63 = math.exp %62 : vector<2x8xf32>
    %cst_34 = arith.constant 1.000000e+00 : f32
    %64 = vector.broadcast %cst_34 : f32 to vector<2x8xf32>
    %65 = arith.addf %64, %63 : vector<2x8xf32>
    %66 = arith.divf %64, %65 : vector<2x8xf32>
    %67 = vector.extract_strided_slice %54 {offsets = [0, 16], sizes = [2, 8], strides = [1, 1]} : vector<2x32xf32> to vector<2x8xf32>
    %68 = math.tanh %67 : vector<2x8xf32>
    %69 = vector.extract_strided_slice %54 {offsets = [0, 24], sizes = [2, 8], strides = [1, 1]} : vector<2x32xf32> to vector<2x8xf32>
    %70 = arith.negf %69 : vector<2x8xf32>
    %71 = math.exp %70 : vector<2x8xf32>
    %cst_35 = arith.constant 1.000000e+00 : f32
    %72 = vector.broadcast %cst_35 : f32 to vector<2x8xf32>
    %73 = arith.addf %72, %71 : vector<2x8xf32>
    %74 = arith.divf %72, %73 : vector<2x8xf32>
    %75 = arith.mulf %66, %18 : vector<2x8xf32>
    %76 = arith.mulf %60, %68 : vector<2x8xf32>
    %77 = arith.addf %75, %76 : vector<2x8xf32>
    %78 = math.tanh %77 : vector<2x8xf32>
    %79 = arith.mulf %74, %78 : vector<2x8xf32>
    %cst_36 = arith.constant dense<0xFF800000> : vector<2xf32>
    %80 = vector.multi_reduction <maximumf>, %79, %cst_36 [1] : vector<2x8xf32> to vector<2xf32>
    %81 = vector.shape_cast %80 : vector<2xf32> to vector<2x1xf32>
    %82 = vector.broadcast %81 : vector<2x1xf32> to vector<2x8xf32>
    %83 = arith.subf %79, %82 : vector<2x8xf32>
    %84 = math.exp %83 : vector<2x8xf32>
    %cst_37 = arith.constant dense<0.000000e+00> : vector<2xf32>
    %85 = vector.multi_reduction <add>, %84, %cst_37 [1] : vector<2x8xf32> to vector<2xf32>
    %86 = vector.shape_cast %85 : vector<2xf32> to vector<2x1xf32>
    %87 = tpu.reciprocal %86 {approx = true} : vector<2x1xf32> -> vector<2x1xf32>
    %88 = vector.broadcast %87 : vector<2x1xf32> to vector<2x8xf32>
    %89 = arith.mulf %84, %88 : vector<2x8xf32>
    %90 = arith.index_cast %20 : i32 to index
    %c0_38 = arith.constant 0 : index
    %91 = vector.load %arg11[%90, %c0_38] : memref<16x8xf32, #tpu.memory_space<vmem>>, vector<2x8xf32>
    tpu.vector_store %arg11[%90, %c0_38], %89 {strides = array<i32>} : memref<16x8xf32, #tpu.memory_space<vmem>>, vector<2x8xf32>,
    %c1_i32 = arith.constant 1 : i32
    %c2_i32_39 = arith.constant 2 : i32
    %92 = arith.muli %c1_i32, %c2_i32_39 : i32
    %93 = tpu.assume_multiple %92, 2 : i32
    %94 = arith.index_cast %93 : i32 to index
    %c0_40 = arith.constant 0 : index
    %95 = vector.load %arg10[%94, %c0_40] : memref<16x32xf32, #tpu.memory_space<vmem>>, vector<2x32xf32>
    %cst_41 = arith.constant dense<0.000000e+00> : vector<2x32xf32>
    %96 = tpu.matmul %49, %3, %cst_41 {dimension_numbers = #tpu.dot_dimension_numbers<[1], [0], [0], [1], [0, 0, 1, 1], [], []>} : vector<2x8xf32>, vector<8x32xf32>, vector<2x32xf32> -> vector<2x32xf32>
    %97 = arith.addf %95, %96 : vector<2x32xf32>
    %98 = vector.extract_strided_slice %97 {offsets = [0, 0], sizes = [2, 8], strides = [1, 1]} : vector<2x32xf32> to vector<2x8xf32>
    %99 = arith.negf %98 : vector<2x8xf32>
    %100 = math.exp %99 : vector<2x8xf32>
    %cst_42 = arith.constant 1.000000e+00 : f32
    %101 = vector.broadcast %cst_42 : f32 to vector<2x8xf32>
    %102 = arith.addf %101, %100 : vector<2x8xf32>
    %103 = arith.divf %101, %102 : vector<2x8xf32>
    %104 = vector.extract_strided_slice %97 {offsets = [0, 8], sizes = [2, 8], strides = [1, 1]} : vector<2x32xf32> to vector<2x8xf32>
    %105 = arith.negf %104 : vector<2x8xf32>
    %106 = math.exp %105 : vector<2x8xf32>
    %cst_43 = arith.constant 1.000000e+00 : f32
    %107 = vector.broadcast %cst_43 : f32 to vector<2x8xf32>
    %108 = arith.addf %107, %106 : vector<2x8xf32>
    %109 = arith.divf %107, %108 : vector<2x8xf32>
    %110 = vector.extract_strided_slice %97 {offsets = [0, 16], sizes = [2, 8], strides = [1, 1]} : vector<2x32xf32> to vector<2x8xf32>
    %111 = math.tanh %110 : vector<2x8xf32>
    %112 = vector.extract_strided_slice %97 {offsets = [0, 24], sizes = [2, 8], strides = [1, 1]} : vector<2x32xf32> to vector<2x8xf32>
    %113 = arith.negf %112 : vector<2x8xf32>
    %114 = math.exp %113 : vector<2x8xf32>
    %cst_44 = arith.constant 1.000000e+00 : f32
    %115 = vector.broadcast %cst_44 : f32 to vector<2x8xf32>
    %116 = arith.addf %115, %114 : vector<2x8xf32>
    %117 = arith.divf %115, %116 : vector<2x8xf32>
    %118 = arith.mulf %109, %47 : vector<2x8xf32>
    %119 = arith.mulf %103, %111 : vector<2x8xf32>
    %120 = arith.addf %118, %119 : vector<2x8xf32>
    %121 = math.tanh %120 : vector<2x8xf32>
    %122 = arith.mulf %117, %121 : vector<2x8xf32>
    %cst_45 = arith.constant dense<0.000000e+00> : vector<2x32xf32>
    %123 = tpu.matmul %122, %4, %cst_45 {dimension_numbers = #tpu.dot_dimension_numbers<[1], [0], [0], [1], [0, 0, 1, 1], [], []>} : vector<2x8xf32>, vector<8x32xf32>, vector<2x32xf32> -> vector<2x32xf32>
    %124 = vector.broadcast %6 : vector<1x32xf32> to vector<2x32xf32>
    %125 = arith.addf %124, %123 : vector<2x32xf32>
    %cst_46 = arith.constant dense<0.000000e+00> : vector<2x32xf32>
    %126 = tpu.matmul %79, %5, %cst_46 {dimension_numbers = #tpu.dot_dimension_numbers<[1], [0], [0], [1], [0, 0, 1, 1], [], []>} : vector<2x8xf32>, vector<8x32xf32>, vector<2x32xf32> -> vector<2x32xf32>
    %127 = arith.addf %125, %126 : vector<2x32xf32>
    %128 = vector.extract_strided_slice %127 {offsets = [0, 0], sizes = [2, 8], strides = [1, 1]} : vector<2x32xf32> to vector<2x8xf32>
    %129 = arith.negf %128 : vector<2x8xf32>
    %130 = math.exp %129 : vector<2x8xf32>
    %cst_47 = arith.constant 1.000000e+00 : f32
    %131 = vector.broadcast %cst_47 : f32 to vector<2x8xf32>
    %132 = arith.addf %131, %130 : vector<2x8xf32>
    %133 = arith.divf %131, %132 : vector<2x8xf32>
    %134 = vector.extract_strided_slice %127 {offsets = [0, 8], sizes = [2, 8], strides = [1, 1]} : vector<2x32xf32> to vector<2x8xf32>
    %135 = arith.negf %134 : vector<2x8xf32>
    %136 = math.exp %135 : vector<2x8xf32>
    %cst_48 = arith.constant 1.000000e+00 : f32
    %137 = vector.broadcast %cst_48 : f32 to vector<2x8xf32>
    %138 = arith.addf %137, %136 : vector<2x8xf32>
    %139 = arith.divf %137, %138 : vector<2x8xf32>
    %140 = vector.extract_strided_slice %127 {offsets = [0, 16], sizes = [2, 8], strides = [1, 1]} : vector<2x32xf32> to vector<2x8xf32>
    %141 = math.tanh %140 : vector<2x8xf32>
    %142 = vector.extract_strided_slice %127 {offsets = [0, 24], sizes = [2, 8], strides = [1, 1]} : vector<2x32xf32> to vector<2x8xf32>
    %143 = arith.negf %142 : vector<2x8xf32>
    %144 = math.exp %143 : vector<2x8xf32>
    %cst_49 = arith.constant 1.000000e+00 : f32
    %145 = vector.broadcast %cst_49 : f32 to vector<2x8xf32>
    %146 = arith.addf %145, %144 : vector<2x8xf32>
    %147 = arith.divf %145, %146 : vector<2x8xf32>
    %148 = arith.mulf %139, %77 : vector<2x8xf32>
    %149 = arith.mulf %133, %141 : vector<2x8xf32>
    %150 = arith.addf %148, %149 : vector<2x8xf32>
    %151 = math.tanh %150 : vector<2x8xf32>
    %152 = arith.mulf %147, %151 : vector<2x8xf32>
    %cst_50 = arith.constant dense<0xFF800000> : vector<2xf32>
    %153 = vector.multi_reduction <maximumf>, %152, %cst_50 [1] : vector<2x8xf32> to vector<2xf32>
    %154 = vector.shape_cast %153 : vector<2xf32> to vector<2x1xf32>
    %155 = vector.broadcast %154 : vector<2x1xf32> to vector<2x8xf32>
    %156 = arith.subf %152, %155 : vector<2x8xf32>
    %157 = math.exp %156 : vector<2x8xf32>
    %cst_51 = arith.constant dense<0.000000e+00> : vector<2xf32>
    %158 = vector.multi_reduction <add>, %157, %cst_51 [1] : vector<2x8xf32> to vector<2xf32>
    %159 = vector.shape_cast %158 : vector<2xf32> to vector<2x1xf32>
    %160 = tpu.reciprocal %159 {approx = true} : vector<2x1xf32> -> vector<2x1xf32>
    %161 = vector.broadcast %160 : vector<2x1xf32> to vector<2x8xf32>
    %162 = arith.mulf %157, %161 : vector<2x8xf32>
    %163 = arith.index_cast %93 : i32 to index
    %c0_52 = arith.constant 0 : index
    %164 = vector.load %arg11[%163, %c0_52] : memref<16x8xf32, #tpu.memory_space<vmem>>, vector<2x8xf32>
    tpu.vector_store %arg11[%163, %c0_52], %162 {strides = array<i32>} : memref<16x8xf32, #tpu.memory_space<vmem>>, vector<2x8xf32>,
    %c2_i32_53 = arith.constant 2 : i32
    %c2_i32_54 = arith.constant 2 : i32
    %165 = arith.muli %c2_i32_53, %c2_i32_54 : i32
    %166 = tpu.assume_multiple %165, 2 : i32
    %167 = arith.index_cast %166 : i32 to index
    %c0_55 = arith.constant 0 : index
    %168 = vector.load %arg10[%167, %c0_55] : memref<16x32xf32, #tpu.memory_space<vmem>>, vector<2x32xf32>
    %cst_56 = arith.constant dense<0.000000e+00> : vector<2x32xf32>
    %169 = tpu.matmul %122, %3, %cst_56 {dimension_numbers = #tpu.dot_dimension_numbers<[1], [0], [0], [1], [0, 0, 1, 1], [], []>} : vector<2x8xf32>, vector<8x32xf32>, vector<2x32xf32> -> vector<2x32xf32>
    %170 = arith.addf %168, %169 : vector<2x32xf32>
    %171 = vector.extract_strided_slice %170 {offsets = [0, 0], sizes = [2, 8], strides = [1, 1]} : vector<2x32xf32> to vector<2x8xf32>
    %172 = arith.negf %171 : vector<2x8xf32>
    %173 = math.exp %172 : vector<2x8xf32>
    %cst_57 = arith.constant 1.000000e+00 : f32
    %174 = vector.broadcast %cst_57 : f32 to vector<2x8xf32>
    %175 = arith.addf %174, %173 : vector<2x8xf32>
    %176 = arith.divf %174, %175 : vector<2x8xf32>
    %177 = vector.extract_strided_slice %170 {offsets = [0, 8], sizes = [2, 8], strides = [1, 1]} : vector<2x32xf32> to vector<2x8xf32>
    %178 = arith.negf %177 : vector<2x8xf32>
    %179 = math.exp %178 : vector<2x8xf32>
    %cst_58 = arith.constant 1.000000e+00 : f32
    %180 = vector.broadcast %cst_58 : f32 to vector<2x8xf32>
    %181 = arith.addf %180, %179 : vector<2x8xf32>
    %182 = arith.divf %180, %181 : vector<2x8xf32>
    %183 = vector.extract_strided_slice %170 {offsets = [0, 16], sizes = [2, 8], strides = [1, 1]} : vector<2x32xf32> to vector<2x8xf32>
    %184 = math.tanh %183 : vector<2x8xf32>
    %185 = vector.extract_strided_slice %170 {offsets = [0, 24], sizes = [2, 8], strides = [1, 1]} : vector<2x32xf32> to vector<2x8xf32>
    %186 = arith.negf %185 : vector<2x8xf32>
    %187 = math.exp %186 : vector<2x8xf32>
    %cst_59 = arith.constant 1.000000e+00 : f32
    %188 = vector.broadcast %cst_59 : f32 to vector<2x8xf32>
    %189 = arith.addf %188, %187 : vector<2x8xf32>
    %190 = arith.divf %188, %189 : vector<2x8xf32>
    %191 = arith.mulf %182, %120 : vector<2x8xf32>
    %192 = arith.mulf %176, %184 : vector<2x8xf32>
    %193 = arith.addf %191, %192 : vector<2x8xf32>
    %194 = math.tanh %193 : vector<2x8xf32>
    %195 = arith.mulf %190, %194 : vector<2x8xf32>
    %cst_60 = arith.constant dense<0.000000e+00> : vector<2x32xf32>
    %196 = tpu.matmul %195, %4, %cst_60 {dimension_numbers = #tpu.dot_dimension_numbers<[1], [0], [0], [1], [0, 0, 1, 1], [], []>} : vector<2x8xf32>, vector<8x32xf32>, vector<2x32xf32> -> vector<2x32xf32>
    %197 = vector.broadcast %6 : vector<1x32xf32> to vector<2x32xf32>
    %198 = arith.addf %197, %196 : vector<2x32xf32>
    %cst_61 = arith.constant dense<0.000000e+00> : vector<2x32xf32>
    %199 = tpu.matmul %152, %5, %cst_61 {dimension_numbers = #tpu.dot_dimension_numbers<[1], [0], [0], [1], [0, 0, 1, 1], [], []>} : vector<2x8xf32>, vector<8x32xf32>, vector<2x32xf32> -> vector<2x32xf32>
    %200 = arith.addf %198, %199 : vector<2x32xf32>
    %201 = vector.extract_strided_slice %200 {offsets = [0, 0], sizes = [2, 8], strides = [1, 1]} : vector<2x32xf32> to vector<2x8xf32>
    %202 = arith.negf %201 : vector<2x8xf32>
    %203 = math.exp %202 : vector<2x8xf32>
    %cst_62 = arith.constant 1.000000e+00 : f32
    %204 = vector.broadcast %cst_62 : f32 to vector<2x8xf32>
    %205 = arith.addf %204, %203 : vector<2x8xf32>
    %206 = arith.divf %204, %205 : vector<2x8xf32>
    %207 = vector.extract_strided_slice %200 {offsets = [0, 8], sizes = [2, 8], strides = [1, 1]} : vector<2x32xf32> to vector<2x8xf32>
    %208 = arith.negf %207 : vector<2x8xf32>
    %209 = math.exp %208 : vector<2x8xf32>
    %cst_63 = arith.constant 1.000000e+00 : f32
    %210 = vector.broadcast %cst_63 : f32 to vector<2x8xf32>
    %211 = arith.addf %210, %209 : vector<2x8xf32>
    %212 = arith.divf %210, %211 : vector<2x8xf32>
    %213 = vector.extract_strided_slice %200 {offsets = [0, 16], sizes = [2, 8], strides = [1, 1]} : vector<2x32xf32> to vector<2x8xf32>
    %214 = math.tanh %213 : vector<2x8xf32>
    %215 = vector.extract_strided_slice %200 {offsets = [0, 24], sizes = [2, 8], strides = [1, 1]} : vector<2x32xf32> to vector<2x8xf32>
    %216 = arith.negf %215 : vector<2x8xf32>
    %217 = math.exp %216 : vector<2x8xf32>
    %cst_64 = arith.constant 1.000000e+00 : f32
    %218 = vector.broadcast %cst_64 : f32 to vector<2x8xf32>
    %219 = arith.addf %218, %217 : vector<2x8xf32>
    %220 = arith.divf %218, %219 : vector<2x8xf32>
    %221 = arith.mulf %212, %150 : vector<2x8xf32>
    %222 = arith.mulf %206, %214 : vector<2x8xf32>
    %223 = arith.addf %221, %222 : vector<2x8xf32>
    %224 = math.tanh %223 : vector<2x8xf32>
    %225 = arith.mulf %220, %224 : vector<2x8xf32>
    %cst_65 = arith.constant dense<0xFF800000> : vector<2xf32>
    %226 = vector.multi_reduction <maximumf>, %225, %cst_65 [1] : vector<2x8xf32> to vector<2xf32>
    %227 = vector.shape_cast %226 : vector<2xf32> to vector<2x1xf32>
    %228 = vector.broadcast %227 : vector<2x1xf32> to vector<2x8xf32>
    %229 = arith.subf %225, %228 : vector<2x8xf32>
    %230 = math.exp %229 : vector<2x8xf32>
    %cst_66 = arith.constant dense<0.000000e+00> : vector<2xf32>
    %231 = vector.multi_reduction <add>, %230, %cst_66 [1] : vector<2x8xf32> to vector<2xf32>
    %232 = vector.shape_cast %231 : vector<2xf32> to vector<2x1xf32>
    %233 = tpu.reciprocal %232 {approx = true} : vector<2x1xf32> -> vector<2x1xf32>
    %234 = vector.broadcast %233 : vector<2x1xf32> to vector<2x8xf32>
    %235 = arith.mulf %230, %234 : vector<2x8xf32>
    %236 = arith.index_cast %166 : i32 to index
    %c0_67 = arith.constant 0 : index
    %237 = vector.load %arg11[%236, %c0_67] : memref<16x8xf32, #tpu.memory_space<vmem>>, vector<2x8xf32>
    tpu.vector_store %arg11[%236, %c0_67], %235 {strides = array<i32>} : memref<16x8xf32, #tpu.memory_space<vmem>>, vector<2x8xf32>,
    %c3_i32 = arith.constant 3 : i32
    %c2_i32_68 = arith.constant 2 : i32
    %238 = arith.muli %c3_i32, %c2_i32_68 : i32
    %239 = tpu.assume_multiple %238, 2 : i32
    %240 = arith.index_cast %239 : i32 to index
    %c0_69 = arith.constant 0 : index
    %241 = vector.load %arg10[%240, %c0_69] : memref<16x32xf32, #tpu.memory_space<vmem>>, vector<2x32xf32>
    %cst_70 = arith.constant dense<0.000000e+00> : vector<2x32xf32>
    %242 = tpu.matmul %195, %3, %cst_70 {dimension_numbers = #tpu.dot_dimension_numbers<[1], [0], [0], [1], [0, 0, 1, 1], [], []>} : vector<2x8xf32>, vector<8x32xf32>, vector<2x32xf32> -> vector<2x32xf32>
    %243 = arith.addf %241, %242 : vector<2x32xf32>
    %244 = vector.extract_strided_slice %243 {offsets = [0, 0], sizes = [2, 8], strides = [1, 1]} : vector<2x32xf32> to vector<2x8xf32>
    %245 = arith.negf %244 : vector<2x8xf32>
    %246 = math.exp %245 : vector<2x8xf32>
    %cst_71 = arith.constant 1.000000e+00 : f32
    %247 = vector.broadcast %cst_71 : f32 to vector<2x8xf32>
    %248 = arith.addf %247, %246 : vector<2x8xf32>
    %249 = arith.divf %247, %248 : vector<2x8xf32>
    %250 = vector.extract_strided_slice %243 {offsets = [0, 8], sizes = [2, 8], strides = [1, 1]} : vector<2x32xf32> to vector<2x8xf32>
    %251 = arith.negf %250 : vector<2x8xf32>
    %252 = math.exp %251 : vector<2x8xf32>
    %cst_72 = arith.constant 1.000000e+00 : f32
    %253 = vector.broadcast %cst_72 : f32 to vector<2x8xf32>
    %254 = arith.addf %253, %252 : vector<2x8xf32>
    %255 = arith.divf %253, %254 : vector<2x8xf32>
    %256 = vector.extract_strided_slice %243 {offsets = [0, 16], sizes = [2, 8], strides = [1, 1]} : vector<2x32xf32> to vector<2x8xf32>
    %257 = math.tanh %256 : vector<2x8xf32>
    %258 = vector.extract_strided_slice %243 {offsets = [0, 24], sizes = [2, 8], strides = [1, 1]} : vector<2x32xf32> to vector<2x8xf32>
    %259 = arith.negf %258 : vector<2x8xf32>
    %260 = math.exp %259 : vector<2x8xf32>
    %cst_73 = arith.constant 1.000000e+00 : f32
    %261 = vector.broadcast %cst_73 : f32 to vector<2x8xf32>
    %262 = arith.addf %261, %260 : vector<2x8xf32>
    %263 = arith.divf %261, %262 : vector<2x8xf32>
    %264 = arith.mulf %255, %193 : vector<2x8xf32>
    %265 = arith.mulf %249, %257 : vector<2x8xf32>
    %266 = arith.addf %264, %265 : vector<2x8xf32>
    %267 = math.tanh %266 : vector<2x8xf32>
    %268 = arith.mulf %263, %267 : vector<2x8xf32>
    %cst_74 = arith.constant dense<0.000000e+00> : vector<2x32xf32>
    %269 = tpu.matmul %268, %4, %cst_74 {dimension_numbers = #tpu.dot_dimension_numbers<[1], [0], [0], [1], [0, 0, 1, 1], [], []>} : vector<2x8xf32>, vector<8x32xf32>, vector<2x32xf32> -> vector<2x32xf32>
    %270 = vector.broadcast %6 : vector<1x32xf32> to vector<2x32xf32>
    %271 = arith.addf %270, %269 : vector<2x32xf32>
    %cst_75 = arith.constant dense<0.000000e+00> : vector<2x32xf32>
    %272 = tpu.matmul %225, %5, %cst_75 {dimension_numbers = #tpu.dot_dimension_numbers<[1], [0], [0], [1], [0, 0, 1, 1], [], []>} : vector<2x8xf32>, vector<8x32xf32>, vector<2x32xf32> -> vector<2x32xf32>
    %273 = arith.addf %271, %272 : vector<2x32xf32>
    %274 = vector.extract_strided_slice %273 {offsets = [0, 0], sizes = [2, 8], strides = [1, 1]} : vector<2x32xf32> to vector<2x8xf32>
    %275 = arith.negf %274 : vector<2x8xf32>
    %276 = math.exp %275 : vector<2x8xf32>
    %cst_76 = arith.constant 1.000000e+00 : f32
    %277 = vector.broadcast %cst_76 : f32 to vector<2x8xf32>
    %278 = arith.addf %277, %276 : vector<2x8xf32>
    %279 = arith.divf %277, %278 : vector<2x8xf32>
    %280 = vector.extract_strided_slice %273 {offsets = [0, 8], sizes = [2, 8], strides = [1, 1]} : vector<2x32xf32> to vector<2x8xf32>
    %281 = arith.negf %280 : vector<2x8xf32>
    %282 = math.exp %281 : vector<2x8xf32>
    %cst_77 = arith.constant 1.000000e+00 : f32
    %283 = vector.broadcast %cst_77 : f32 to vector<2x8xf32>
    %284 = arith.addf %283, %282 : vector<2x8xf32>
    %285 = arith.divf %283, %284 : vector<2x8xf32>
    %286 = vector.extract_strided_slice %273 {offsets = [0, 16], sizes = [2, 8], strides = [1, 1]} : vector<2x32xf32> to vector<2x8xf32>
    %287 = math.tanh %286 : vector<2x8xf32>
    %288 = vector.extract_strided_slice %273 {offsets = [0, 24], sizes = [2, 8], strides = [1, 1]} : vector<2x32xf32> to vector<2x8xf32>
    %289 = arith.negf %288 : vector<2x8xf32>
    %290 = math.exp %289 : vector<2x8xf32>
    %cst_78 = arith.constant 1.000000e+00 : f32
    %291 = vector.broadcast %cst_78 : f32 to vector<2x8xf32>
    %292 = arith.addf %291, %290 : vector<2x8xf32>
    %293 = arith.divf %291, %292 : vector<2x8xf32>
    %294 = arith.mulf %285, %223 : vector<2x8xf32>
    %295 = arith.mulf %279, %287 : vector<2x8xf32>
    %296 = arith.addf %294, %295 : vector<2x8xf32>
    %297 = math.tanh %296 : vector<2x8xf32>
    %298 = arith.mulf %293, %297 : vector<2x8xf32>
    %cst_79 = arith.constant dense<0xFF800000> : vector<2xf32>
    %299 = vector.multi_reduction <maximumf>, %298, %cst_79 [1] : vector<2x8xf32> to vector<2xf32>
    %300 = vector.shape_cast %299 : vector<2xf32> to vector<2x1xf32>
    %301 = vector.broadcast %300 : vector<2x1xf32> to vector<2x8xf32>
    %302 = arith.subf %298, %301 : vector<2x8xf32>
    %303 = math.exp %302 : vector<2x8xf32>
    %cst_80 = arith.constant dense<0.000000e+00> : vector<2xf32>
    %304 = vector.multi_reduction <add>, %303, %cst_80 [1] : vector<2x8xf32> to vector<2xf32>
    %305 = vector.shape_cast %304 : vector<2xf32> to vector<2x1xf32>
    %306 = tpu.reciprocal %305 {approx = true} : vector<2x1xf32> -> vector<2x1xf32>
    %307 = vector.broadcast %306 : vector<2x1xf32> to vector<2x8xf32>
    %308 = arith.mulf %303, %307 : vector<2x8xf32>
    %309 = arith.index_cast %239 : i32 to index
    %c0_81 = arith.constant 0 : index
    %310 = vector.load %arg11[%309, %c0_81] : memref<16x8xf32, #tpu.memory_space<vmem>>, vector<2x8xf32>
    tpu.vector_store %arg11[%309, %c0_81], %308 {strides = array<i32>} : memref<16x8xf32, #tpu.memory_space<vmem>>, vector<2x8xf32>,
    %c4_i32 = arith.constant 4 : i32
    %c2_i32_82 = arith.constant 2 : i32
    %311 = arith.muli %c4_i32, %c2_i32_82 : i32
    %312 = tpu.assume_multiple %311, 2 : i32
    %313 = arith.index_cast %312 : i32 to index
    %c0_83 = arith.constant 0 : index
    %314 = vector.load %arg10[%313, %c0_83] : memref<16x32xf32, #tpu.memory_space<vmem>>, vector<2x32xf32>
    %cst_84 = arith.constant dense<0.000000e+00> : vector<2x32xf32>
    %315 = tpu.matmul %268, %3, %cst_84 {dimension_numbers = #tpu.dot_dimension_numbers<[1], [0], [0], [1], [0, 0, 1, 1], [], []>} : vector<2x8xf32>, vector<8x32xf32>, vector<2x32xf32> -> vector<2x32xf32>
    %316 = arith.addf %314, %315 : vector<2x32xf32>
    %317 = vector.extract_strided_slice %316 {offsets = [0, 0], sizes = [2, 8], strides = [1, 1]} : vector<2x32xf32> to vector<2x8xf32>
    %318 = arith.negf %317 : vector<2x8xf32>
    %319 = math.exp %318 : vector<2x8xf32>
    %cst_85 = arith.constant 1.000000e+00 : f32
    %320 = vector.broadcast %cst_85 : f32 to vector<2x8xf32>
    %321 = arith.addf %320, %319 : vector<2x8xf32>
    %322 = arith.divf %320, %321 : vector<2x8xf32>
    %323 = vector.extract_strided_slice %316 {offsets = [0, 8], sizes = [2, 8], strides = [1, 1]} : vector<2x32xf32> to vector<2x8xf32>
    %324 = arith.negf %323 : vector<2x8xf32>
    %325 = math.exp %324 : vector<2x8xf32>
    %cst_86 = arith.constant 1.000000e+00 : f32
    %326 = vector.broadcast %cst_86 : f32 to vector<2x8xf32>
    %327 = arith.addf %326, %325 : vector<2x8xf32>
    %328 = arith.divf %326, %327 : vector<2x8xf32>
    %329 = vector.extract_strided_slice %316 {offsets = [0, 16], sizes = [2, 8], strides = [1, 1]} : vector<2x32xf32> to vector<2x8xf32>
    %330 = math.tanh %329 : vector<2x8xf32>
    %331 = vector.extract_strided_slice %316 {offsets = [0, 24], sizes = [2, 8], strides = [1, 1]} : vector<2x32xf32> to vector<2x8xf32>
    %332 = arith.negf %331 : vector<2x8xf32>
    %333 = math.exp %332 : vector<2x8xf32>
    %cst_87 = arith.constant 1.000000e+00 : f32
    %334 = vector.broadcast %cst_87 : f32 to vector<2x8xf32>
    %335 = arith.addf %334, %333 : vector<2x8xf32>
    %336 = arith.divf %334, %335 : vector<2x8xf32>
    %337 = arith.mulf %328, %266 : vector<2x8xf32>
    %338 = arith.mulf %322, %330 : vector<2x8xf32>
    %339 = arith.addf %337, %338 : vector<2x8xf32>
    %340 = math.tanh %339 : vector<2x8xf32>
    %341 = arith.mulf %336, %340 : vector<2x8xf32>
    %cst_88 = arith.constant dense<0.000000e+00> : vector<2x32xf32>
    %342 = tpu.matmul %341, %4, %cst_88 {dimension_numbers = #tpu.dot_dimension_numbers<[1], [0], [0], [1], [0, 0, 1, 1], [], []>} : vector<2x8xf32>, vector<8x32xf32>, vector<2x32xf32> -> vector<2x32xf32>
    %343 = vector.broadcast %6 : vector<1x32xf32> to vector<2x32xf32>
    %344 = arith.addf %343, %342 : vector<2x32xf32>
    %cst_89 = arith.constant dense<0.000000e+00> : vector<2x32xf32>
    %345 = tpu.matmul %298, %5, %cst_89 {dimension_numbers = #tpu.dot_dimension_numbers<[1], [0], [0], [1], [0, 0, 1, 1], [], []>} : vector<2x8xf32>, vector<8x32xf32>, vector<2x32xf32> -> vector<2x32xf32>
    %346 = arith.addf %344, %345 : vector<2x32xf32>
    %347 = vector.extract_strided_slice %346 {offsets = [0, 0], sizes = [2, 8], strides = [1, 1]} : vector<2x32xf32> to vector<2x8xf32>
    %348 = arith.negf %347 : vector<2x8xf32>
    %349 = math.exp %348 : vector<2x8xf32>
    %cst_90 = arith.constant 1.000000e+00 : f32
    %350 = vector.broadcast %cst_90 : f32 to vector<2x8xf32>
    %351 = arith.addf %350, %349 : vector<2x8xf32>
    %352 = arith.divf %350, %351 : vector<2x8xf32>
    %353 = vector.extract_strided_slice %346 {offsets = [0, 8], sizes = [2, 8], strides = [1, 1]} : vector<2x32xf32> to vector<2x8xf32>
    %354 = arith.negf %353 : vector<2x8xf32>
    %355 = math.exp %354 : vector<2x8xf32>
    %cst_91 = arith.constant 1.000000e+00 : f32
    %356 = vector.broadcast %cst_91 : f32 to vector<2x8xf32>
    %357 = arith.addf %356, %355 : vector<2x8xf32>
    %358 = arith.divf %356, %357 : vector<2x8xf32>
    %359 = vector.extract_strided_slice %346 {offsets = [0, 16], sizes = [2, 8], strides = [1, 1]} : vector<2x32xf32> to vector<2x8xf32>
    %360 = math.tanh %359 : vector<2x8xf32>
    %361 = vector.extract_strided_slice %346 {offsets = [0, 24], sizes = [2, 8], strides = [1, 1]} : vector<2x32xf32> to vector<2x8xf32>
    %362 = arith.negf %361 : vector<2x8xf32>
    %363 = math.exp %362 : vector<2x8xf32>
    %cst_92 = arith.constant 1.000000e+00 : f32
    %364 = vector.broadcast %cst_92 : f32 to vector<2x8xf32>
    %365 = arith.addf %364, %363 : vector<2x8xf32>
    %366 = arith.divf %364, %365 : vector<2x8xf32>
    %367 = arith.mulf %358, %296 : vector<2x8xf32>
    %368 = arith.mulf %352, %360 : vector<2x8xf32>
    %369 = arith.addf %367, %368 : vector<2x8xf32>
    %370 = math.tanh %369 : vector<2x8xf32>
    %371 = arith.mulf %366, %370 : vector<2x8xf32>
    %cst_93 = arith.constant dense<0xFF800000> : vector<2xf32>
    %372 = vector.multi_reduction <maximumf>, %371, %cst_93 [1] : vector<2x8xf32> to vector<2xf32>
    %373 = vector.shape_cast %372 : vector<2xf32> to vector<2x1xf32>
    %374 = vector.broadcast %373 : vector<2x1xf32> to vector<2x8xf32>
    %375 = arith.subf %371, %374 : vector<2x8xf32>
    %376 = math.exp %375 : vector<2x8xf32>
    %cst_94 = arith.constant dense<0.000000e+00> : vector<2xf32>
    %377 = vector.multi_reduction <add>, %376, %cst_94 [1] : vector<2x8xf32> to vector<2xf32>
    %378 = vector.shape_cast %377 : vector<2xf32> to vector<2x1xf32>
    %379 = tpu.reciprocal %378 {approx = true} : vector<2x1xf32> -> vector<2x1xf32>
    %380 = vector.broadcast %379 : vector<2x1xf32> to vector<2x8xf32>
    %381 = arith.mulf %376, %380 : vector<2x8xf32>
    %382 = arith.index_cast %312 : i32 to index
    %c0_95 = arith.constant 0 : index
    %383 = vector.load %arg11[%382, %c0_95] : memref<16x8xf32, #tpu.memory_space<vmem>>, vector<2x8xf32>
    tpu.vector_store %arg11[%382, %c0_95], %381 {strides = array<i32>} : memref<16x8xf32, #tpu.memory_space<vmem>>, vector<2x8xf32>,
    %c5_i32 = arith.constant 5 : i32
    %c2_i32_96 = arith.constant 2 : i32
    %384 = arith.muli %c5_i32, %c2_i32_96 : i32
    %385 = tpu.assume_multiple %384, 2 : i32
    %386 = arith.index_cast %385 : i32 to index
    %c0_97 = arith.constant 0 : index
    %387 = vector.load %arg10[%386, %c0_97] : memref<16x32xf32, #tpu.memory_space<vmem>>, vector<2x32xf32>
    %cst_98 = arith.constant dense<0.000000e+00> : vector<2x32xf32>
    %388 = tpu.matmul %341, %3, %cst_98 {dimension_numbers = #tpu.dot_dimension_numbers<[1], [0], [0], [1], [0, 0, 1, 1], [], []>} : vector<2x8xf32>, vector<8x32xf32>, vector<2x32xf32> -> vector<2x32xf32>
    %389 = arith.addf %387, %388 : vector<2x32xf32>
    %390 = vector.extract_strided_slice %389 {offsets = [0, 0], sizes = [2, 8], strides = [1, 1]} : vector<2x32xf32> to vector<2x8xf32>
    %391 = arith.negf %390 : vector<2x8xf32>
    %392 = math.exp %391 : vector<2x8xf32>
    %cst_99 = arith.constant 1.000000e+00 : f32
    %393 = vector.broadcast %cst_99 : f32 to vector<2x8xf32>
    %394 = arith.addf %393, %392 : vector<2x8xf32>
    %395 = arith.divf %393, %394 : vector<2x8xf32>
    %396 = vector.extract_strided_slice %389 {offsets = [0, 8], sizes = [2, 8], strides = [1, 1]} : vector<2x32xf32> to vector<2x8xf32>
    %397 = arith.negf %396 : vector<2x8xf32>
    %398 = math.exp %397 : vector<2x8xf32>
    %cst_100 = arith.constant 1.000000e+00 : f32
    %399 = vector.broadcast %cst_100 : f32 to vector<2x8xf32>
    %400 = arith.addf %399, %398 : vector<2x8xf32>
    %401 = arith.divf %399, %400 : vector<2x8xf32>
    %402 = vector.extract_strided_slice %389 {offsets = [0, 16], sizes = [2, 8], strides = [1, 1]} : vector<2x32xf32> to vector<2x8xf32>
    %403 = math.tanh %402 : vector<2x8xf32>
    %404 = vector.extract_strided_slice %389 {offsets = [0, 24], sizes = [2, 8], strides = [1, 1]} : vector<2x32xf32> to vector<2x8xf32>
    %405 = arith.negf %404 : vector<2x8xf32>
    %406 = math.exp %405 : vector<2x8xf32>
    %cst_101 = arith.constant 1.000000e+00 : f32
    %407 = vector.broadcast %cst_101 : f32 to vector<2x8xf32>
    %408 = arith.addf %407, %406 : vector<2x8xf32>
    %409 = arith.divf %407, %408 : vector<2x8xf32>
    %410 = arith.mulf %401, %339 : vector<2x8xf32>
    %411 = arith.mulf %395, %403 : vector<2x8xf32>
    %412 = arith.addf %410, %411 : vector<2x8xf32>
    %413 = math.tanh %412 : vector<2x8xf32>
    %414 = arith.mulf %409, %413 : vector<2x8xf32>
    %cst_102 = arith.constant dense<0.000000e+00> : vector<2x32xf32>
    %415 = tpu.matmul %414, %4, %cst_102 {dimension_numbers = #tpu.dot_dimension_numbers<[1], [0], [0], [1], [0, 0, 1, 1], [], []>} : vector<2x8xf32>, vector<8x32xf32>, vector<2x32xf32> -> vector<2x32xf32>
    %416 = vector.broadcast %6 : vector<1x32xf32> to vector<2x32xf32>
    %417 = arith.addf %416, %415 : vector<2x32xf32>
    %cst_103 = arith.constant dense<0.000000e+00> : vector<2x32xf32>
    %418 = tpu.matmul %371, %5, %cst_103 {dimension_numbers = #tpu.dot_dimension_numbers<[1], [0], [0], [1], [0, 0, 1, 1], [], []>} : vector<2x8xf32>, vector<8x32xf32>, vector<2x32xf32> -> vector<2x32xf32>
    %419 = arith.addf %417, %418 : vector<2x32xf32>
    %420 = vector.extract_strided_slice %419 {offsets = [0, 0], sizes = [2, 8], strides = [1, 1]} : vector<2x32xf32> to vector<2x8xf32>
    %421 = arith.negf %420 : vector<2x8xf32>
    %422 = math.exp %421 : vector<2x8xf32>
    %cst_104 = arith.constant 1.000000e+00 : f32
    %423 = vector.broadcast %cst_104 : f32 to vector<2x8xf32>
    %424 = arith.addf %423, %422 : vector<2x8xf32>
    %425 = arith.divf %423, %424 : vector<2x8xf32>
    %426 = vector.extract_strided_slice %419 {offsets = [0, 8], sizes = [2, 8], strides = [1, 1]} : vector<2x32xf32> to vector<2x8xf32>
    %427 = arith.negf %426 : vector<2x8xf32>
    %428 = math.exp %427 : vector<2x8xf32>
    %cst_105 = arith.constant 1.000000e+00 : f32
    %429 = vector.broadcast %cst_105 : f32 to vector<2x8xf32>
    %430 = arith.addf %429, %428 : vector<2x8xf32>
    %431 = arith.divf %429, %430 : vector<2x8xf32>
    %432 = vector.extract_strided_slice %419 {offsets = [0, 16], sizes = [2, 8], strides = [1, 1]} : vector<2x32xf32> to vector<2x8xf32>
    %433 = math.tanh %432 : vector<2x8xf32>
    %434 = vector.extract_strided_slice %419 {offsets = [0, 24], sizes = [2, 8], strides = [1, 1]} : vector<2x32xf32> to vector<2x8xf32>
    %435 = arith.negf %434 : vector<2x8xf32>
    %436 = math.exp %435 : vector<2x8xf32>
    %cst_106 = arith.constant 1.000000e+00 : f32
    %437 = vector.broadcast %cst_106 : f32 to vector<2x8xf32>
    %438 = arith.addf %437, %436 : vector<2x8xf32>
    %439 = arith.divf %437, %438 : vector<2x8xf32>
    %440 = arith.mulf %431, %369 : vector<2x8xf32>
    %441 = arith.mulf %425, %433 : vector<2x8xf32>
    %442 = arith.addf %440, %441 : vector<2x8xf32>
    %443 = math.tanh %442 : vector<2x8xf32>
    %444 = arith.mulf %439, %443 : vector<2x8xf32>
    %cst_107 = arith.constant dense<0xFF800000> : vector<2xf32>
    %445 = vector.multi_reduction <maximumf>, %444, %cst_107 [1] : vector<2x8xf32> to vector<2xf32>
    %446 = vector.shape_cast %445 : vector<2xf32> to vector<2x1xf32>
    %447 = vector.broadcast %446 : vector<2x1xf32> to vector<2x8xf32>
    %448 = arith.subf %444, %447 : vector<2x8xf32>
    %449 = math.exp %448 : vector<2x8xf32>
    %cst_108 = arith.constant dense<0.000000e+00> : vector<2xf32>
    %450 = vector.multi_reduction <add>, %449, %cst_108 [1] : vector<2x8xf32> to vector<2xf32>
    %451 = vector.shape_cast %450 : vector<2xf32> to vector<2x1xf32>
    %452 = tpu.reciprocal %451 {approx = true} : vector<2x1xf32> -> vector<2x1xf32>
    %453 = vector.broadcast %452 : vector<2x1xf32> to vector<2x8xf32>
    %454 = arith.mulf %449, %453 : vector<2x8xf32>
    %455 = arith.index_cast %385 : i32 to index
    %c0_109 = arith.constant 0 : index
    %456 = vector.load %arg11[%455, %c0_109] : memref<16x8xf32, #tpu.memory_space<vmem>>, vector<2x8xf32>
    tpu.vector_store %arg11[%455, %c0_109], %454 {strides = array<i32>} : memref<16x8xf32, #tpu.memory_space<vmem>>, vector<2x8xf32>,
    %c6_i32 = arith.constant 6 : i32
    %c2_i32_110 = arith.constant 2 : i32
    %457 = arith.muli %c6_i32, %c2_i32_110 : i32
    %458 = tpu.assume_multiple %457, 2 : i32
    %459 = arith.index_cast %458 : i32 to index
    %c0_111 = arith.constant 0 : index
    %460 = vector.load %arg10[%459, %c0_111] : memref<16x32xf32, #tpu.memory_space<vmem>>, vector<2x32xf32>
    %cst_112 = arith.constant dense<0.000000e+00> : vector<2x32xf32>
    %461 = tpu.matmul %414, %3, %cst_112 {dimension_numbers = #tpu.dot_dimension_numbers<[1], [0], [0], [1], [0, 0, 1, 1], [], []>} : vector<2x8xf32>, vector<8x32xf32>, vector<2x32xf32> -> vector<2x32xf32>
    %462 = arith.addf %460, %461 : vector<2x32xf32>
    %463 = vector.extract_strided_slice %462 {offsets = [0, 0], sizes = [2, 8], strides = [1, 1]} : vector<2x32xf32> to vector<2x8xf32>
    %464 = arith.negf %463 : vector<2x8xf32>
    %465 = math.exp %464 : vector<2x8xf32>
    %cst_113 = arith.constant 1.000000e+00 : f32
    %466 = vector.broadcast %cst_113 : f32 to vector<2x8xf32>
    %467 = arith.addf %466, %465 : vector<2x8xf32>
    %468 = arith.divf %466, %467 : vector<2x8xf32>
    %469 = vector.extract_strided_slice %462 {offsets = [0, 8], sizes = [2, 8], strides = [1, 1]} : vector<2x32xf32> to vector<2x8xf32>
    %470 = arith.negf %469 : vector<2x8xf32>
    %471 = math.exp %470 : vector<2x8xf32>
    %cst_114 = arith.constant 1.000000e+00 : f32
    %472 = vector.broadcast %cst_114 : f32 to vector<2x8xf32>
    %473 = arith.addf %472, %471 : vector<2x8xf32>
    %474 = arith.divf %472, %473 : vector<2x8xf32>
    %475 = vector.extract_strided_slice %462 {offsets = [0, 16], sizes = [2, 8], strides = [1, 1]} : vector<2x32xf32> to vector<2x8xf32>
    %476 = math.tanh %475 : vector<2x8xf32>
    %477 = vector.extract_strided_slice %462 {offsets = [0, 24], sizes = [2, 8], strides = [1, 1]} : vector<2x32xf32> to vector<2x8xf32>
    %478 = arith.negf %477 : vector<2x8xf32>
    %479 = math.exp %478 : vector<2x8xf32>
    %cst_115 = arith.constant 1.000000e+00 : f32
    %480 = vector.broadcast %cst_115 : f32 to vector<2x8xf32>
    %481 = arith.addf %480, %479 : vector<2x8xf32>
    %482 = arith.divf %480, %481 : vector<2x8xf32>
    %483 = arith.mulf %474, %412 : vector<2x8xf32>
    %484 = arith.mulf %468, %476 : vector<2x8xf32>
    %485 = arith.addf %483, %484 : vector<2x8xf32>
    %486 = math.tanh %485 : vector<2x8xf32>
    %487 = arith.mulf %482, %486 : vector<2x8xf32>
    %cst_116 = arith.constant dense<0.000000e+00> : vector<2x32xf32>
    %488 = tpu.matmul %487, %4, %cst_116 {dimension_numbers = #tpu.dot_dimension_numbers<[1], [0], [0], [1], [0, 0, 1, 1], [], []>} : vector<2x8xf32>, vector<8x32xf32>, vector<2x32xf32> -> vector<2x32xf32>
    %489 = vector.broadcast %6 : vector<1x32xf32> to vector<2x32xf32>
    %490 = arith.addf %489, %488 : vector<2x32xf32>
    %cst_117 = arith.constant dense<0.000000e+00> : vector<2x32xf32>
    %491 = tpu.matmul %444, %5, %cst_117 {dimension_numbers = #tpu.dot_dimension_numbers<[1], [0], [0], [1], [0, 0, 1, 1], [], []>} : vector<2x8xf32>, vector<8x32xf32>, vector<2x32xf32> -> vector<2x32xf32>
    %492 = arith.addf %490, %491 : vector<2x32xf32>
    %493 = vector.extract_strided_slice %492 {offsets = [0, 0], sizes = [2, 8], strides = [1, 1]} : vector<2x32xf32> to vector<2x8xf32>
    %494 = arith.negf %493 : vector<2x8xf32>
    %495 = math.exp %494 : vector<2x8xf32>
    %cst_118 = arith.constant 1.000000e+00 : f32
    %496 = vector.broadcast %cst_118 : f32 to vector<2x8xf32>
    %497 = arith.addf %496, %495 : vector<2x8xf32>
    %498 = arith.divf %496, %497 : vector<2x8xf32>
    %499 = vector.extract_strided_slice %492 {offsets = [0, 8], sizes = [2, 8], strides = [1, 1]} : vector<2x32xf32> to vector<2x8xf32>
    %500 = arith.negf %499 : vector<2x8xf32>
    %501 = math.exp %500 : vector<2x8xf32>
    %cst_119 = arith.constant 1.000000e+00 : f32
    %502 = vector.broadcast %cst_119 : f32 to vector<2x8xf32>
    %503 = arith.addf %502, %501 : vector<2x8xf32>
    %504 = arith.divf %502, %503 : vector<2x8xf32>
    %505 = vector.extract_strided_slice %492 {offsets = [0, 16], sizes = [2, 8], strides = [1, 1]} : vector<2x32xf32> to vector<2x8xf32>
    %506 = math.tanh %505 : vector<2x8xf32>
    %507 = vector.extract_strided_slice %492 {offsets = [0, 24], sizes = [2, 8], strides = [1, 1]} : vector<2x32xf32> to vector<2x8xf32>
    %508 = arith.negf %507 : vector<2x8xf32>
    %509 = math.exp %508 : vector<2x8xf32>
    %cst_120 = arith.constant 1.000000e+00 : f32
    %510 = vector.broadcast %cst_120 : f32 to vector<2x8xf32>
    %511 = arith.addf %510, %509 : vector<2x8xf32>
    %512 = arith.divf %510, %511 : vector<2x8xf32>
    %513 = arith.mulf %504, %442 : vector<2x8xf32>
    %514 = arith.mulf %498, %506 : vector<2x8xf32>
    %515 = arith.addf %513, %514 : vector<2x8xf32>
    %516 = math.tanh %515 : vector<2x8xf32>
    %517 = arith.mulf %512, %516 : vector<2x8xf32>
    %cst_121 = arith.constant dense<0xFF800000> : vector<2xf32>
    %518 = vector.multi_reduction <maximumf>, %517, %cst_121 [1] : vector<2x8xf32> to vector<2xf32>
    %519 = vector.shape_cast %518 : vector<2xf32> to vector<2x1xf32>
    %520 = vector.broadcast %519 : vector<2x1xf32> to vector<2x8xf32>
    %521 = arith.subf %517, %520 : vector<2x8xf32>
    %522 = math.exp %521 : vector<2x8xf32>
    %cst_122 = arith.constant dense<0.000000e+00> : vector<2xf32>
    %523 = vector.multi_reduction <add>, %522, %cst_122 [1] : vector<2x8xf32> to vector<2xf32>
    %524 = vector.shape_cast %523 : vector<2xf32> to vector<2x1xf32>
    %525 = tpu.reciprocal %524 {approx = true} : vector<2x1xf32> -> vector<2x1xf32>
    %526 = vector.broadcast %525 : vector<2x1xf32> to vector<2x8xf32>
    %527 = arith.mulf %522, %526 : vector<2x8xf32>
    %528 = arith.index_cast %458 : i32 to index
    %c0_123 = arith.constant 0 : index
    %529 = vector.load %arg11[%528, %c0_123] : memref<16x8xf32, #tpu.memory_space<vmem>>, vector<2x8xf32>
    tpu.vector_store %arg11[%528, %c0_123], %527 {strides = array<i32>} : memref<16x8xf32, #tpu.memory_space<vmem>>, vector<2x8xf32>,
    %c7_i32 = arith.constant 7 : i32
    %c2_i32_124 = arith.constant 2 : i32
    %530 = arith.muli %c7_i32, %c2_i32_124 : i32
    %531 = tpu.assume_multiple %530, 2 : i32
    %532 = arith.index_cast %531 : i32 to index
    %c0_125 = arith.constant 0 : index
    %533 = vector.load %arg10[%532, %c0_125] : memref<16x32xf32, #tpu.memory_space<vmem>>, vector<2x32xf32>
    %cst_126 = arith.constant dense<0.000000e+00> : vector<2x32xf32>
    %534 = tpu.matmul %487, %3, %cst_126 {dimension_numbers = #tpu.dot_dimension_numbers<[1], [0], [0], [1], [0, 0, 1, 1], [], []>} : vector<2x8xf32>, vector<8x32xf32>, vector<2x32xf32> -> vector<2x32xf32>
    %535 = arith.addf %533, %534 : vector<2x32xf32>
    %536 = vector.extract_strided_slice %535 {offsets = [0, 0], sizes = [2, 8], strides = [1, 1]} : vector<2x32xf32> to vector<2x8xf32>
    %537 = arith.negf %536 : vector<2x8xf32>
    %538 = math.exp %537 : vector<2x8xf32>
    %cst_127 = arith.constant 1.000000e+00 : f32
    %539 = vector.broadcast %cst_127 : f32 to vector<2x8xf32>
    %540 = arith.addf %539, %538 : vector<2x8xf32>
    %541 = arith.divf %539, %540 : vector<2x8xf32>
    %542 = vector.extract_strided_slice %535 {offsets = [0, 8], sizes = [2, 8], strides = [1, 1]} : vector<2x32xf32> to vector<2x8xf32>
    %543 = arith.negf %542 : vector<2x8xf32>
    %544 = math.exp %543 : vector<2x8xf32>
    %cst_128 = arith.constant 1.000000e+00 : f32
    %545 = vector.broadcast %cst_128 : f32 to vector<2x8xf32>
    %546 = arith.addf %545, %544 : vector<2x8xf32>
    %547 = arith.divf %545, %546 : vector<2x8xf32>
    %548 = vector.extract_strided_slice %535 {offsets = [0, 16], sizes = [2, 8], strides = [1, 1]} : vector<2x32xf32> to vector<2x8xf32>
    %549 = math.tanh %548 : vector<2x8xf32>
    %550 = vector.extract_strided_slice %535 {offsets = [0, 24], sizes = [2, 8], strides = [1, 1]} : vector<2x32xf32> to vector<2x8xf32>
    %551 = arith.negf %550 : vector<2x8xf32>
    %552 = math.exp %551 : vector<2x8xf32>
    %cst_129 = arith.constant 1.000000e+00 : f32
    %553 = vector.broadcast %cst_129 : f32 to vector<2x8xf32>
    %554 = arith.addf %553, %552 : vector<2x8xf32>
    %555 = arith.divf %553, %554 : vector<2x8xf32>
    %556 = arith.mulf %547, %485 : vector<2x8xf32>
    %557 = arith.mulf %541, %549 : vector<2x8xf32>
    %558 = arith.addf %556, %557 : vector<2x8xf32>
    %559 = math.tanh %558 : vector<2x8xf32>
    %560 = arith.mulf %555, %559 : vector<2x8xf32>
    %cst_130 = arith.constant dense<0.000000e+00> : vector<2x32xf32>
    %561 = tpu.matmul %560, %4, %cst_130 {dimension_numbers = #tpu.dot_dimension_numbers<[1], [0], [0], [1], [0, 0, 1, 1], [], []>} : vector<2x8xf32>, vector<8x32xf32>, vector<2x32xf32> -> vector<2x32xf32>
    %562 = vector.broadcast %6 : vector<1x32xf32> to vector<2x32xf32>
    %563 = arith.addf %562, %561 : vector<2x32xf32>
    %cst_131 = arith.constant dense<0.000000e+00> : vector<2x32xf32>
    %564 = tpu.matmul %517, %5, %cst_131 {dimension_numbers = #tpu.dot_dimension_numbers<[1], [0], [0], [1], [0, 0, 1, 1], [], []>} : vector<2x8xf32>, vector<8x32xf32>, vector<2x32xf32> -> vector<2x32xf32>
    %565 = arith.addf %563, %564 : vector<2x32xf32>
    %566 = vector.extract_strided_slice %565 {offsets = [0, 0], sizes = [2, 8], strides = [1, 1]} : vector<2x32xf32> to vector<2x8xf32>
    %567 = arith.negf %566 : vector<2x8xf32>
    %568 = math.exp %567 : vector<2x8xf32>
    %cst_132 = arith.constant 1.000000e+00 : f32
    %569 = vector.broadcast %cst_132 : f32 to vector<2x8xf32>
    %570 = arith.addf %569, %568 : vector<2x8xf32>
    %571 = arith.divf %569, %570 : vector<2x8xf32>
    %572 = vector.extract_strided_slice %565 {offsets = [0, 8], sizes = [2, 8], strides = [1, 1]} : vector<2x32xf32> to vector<2x8xf32>
    %573 = arith.negf %572 : vector<2x8xf32>
    %574 = math.exp %573 : vector<2x8xf32>
    %cst_133 = arith.constant 1.000000e+00 : f32
    %575 = vector.broadcast %cst_133 : f32 to vector<2x8xf32>
    %576 = arith.addf %575, %574 : vector<2x8xf32>
    %577 = arith.divf %575, %576 : vector<2x8xf32>
    %578 = vector.extract_strided_slice %565 {offsets = [0, 16], sizes = [2, 8], strides = [1, 1]} : vector<2x32xf32> to vector<2x8xf32>
    %579 = math.tanh %578 : vector<2x8xf32>
    %580 = vector.extract_strided_slice %565 {offsets = [0, 24], sizes = [2, 8], strides = [1, 1]} : vector<2x32xf32> to vector<2x8xf32>
    %581 = arith.negf %580 : vector<2x8xf32>
    %582 = math.exp %581 : vector<2x8xf32>
    %cst_134 = arith.constant 1.000000e+00 : f32
    %583 = vector.broadcast %cst_134 : f32 to vector<2x8xf32>
    %584 = arith.addf %583, %582 : vector<2x8xf32>
    %585 = arith.divf %583, %584 : vector<2x8xf32>
    %586 = arith.mulf %577, %515 : vector<2x8xf32>
    %587 = arith.mulf %571, %579 : vector<2x8xf32>
    %588 = arith.addf %586, %587 : vector<2x8xf32>
    %589 = math.tanh %588 : vector<2x8xf32>
    %590 = arith.mulf %585, %589 : vector<2x8xf32>
    %cst_135 = arith.constant dense<0xFF800000> : vector<2xf32>
    %591 = vector.multi_reduction <maximumf>, %590, %cst_135 [1] : vector<2x8xf32> to vector<2xf32>
    %592 = vector.shape_cast %591 : vector<2xf32> to vector<2x1xf32>
    %593 = vector.broadcast %592 : vector<2x1xf32> to vector<2x8xf32>
    %594 = arith.subf %590, %593 : vector<2x8xf32>
    %595 = math.exp %594 : vector<2x8xf32>
    %cst_136 = arith.constant dense<0.000000e+00> : vector<2xf32>
    %596 = vector.multi_reduction <add>, %595, %cst_136 [1] : vector<2x8xf32> to vector<2xf32>
    %597 = vector.shape_cast %596 : vector<2xf32> to vector<2x1xf32>
    %598 = tpu.reciprocal %597 {approx = true} : vector<2x1xf32> -> vector<2x1xf32>
    %599 = vector.broadcast %598 : vector<2x1xf32> to vector<2x8xf32>
    %600 = arith.mulf %595, %599 : vector<2x8xf32>
    %601 = arith.index_cast %531 : i32 to index
    %c0_137 = arith.constant 0 : index
    %602 = vector.load %arg11[%601, %c0_137] : memref<16x8xf32, #tpu.memory_space<vmem>>, vector<2x8xf32>
    tpu.vector_store %arg11[%601, %c0_137], %600 {strides = array<i32>} : memref<16x8xf32, #tpu.memory_space<vmem>>, vector<2x8xf32>,
    %c8_i32 = arith.constant 8 : i32
    %c0_138 = arith.constant 0 : index
    %c0_139 = arith.constant 0 : index
    %603 = vector.load %arg12[%c0_138, %c0_139] : memref<2x8xf32, #tpu.memory_space<vmem>>, vector<2x8xf32>
    tpu.vector_store %arg12[%c0_138, %c0_139], %560 {strides = array<i32>} : memref<2x8xf32, #tpu.memory_space<vmem>>, vector<2x8xf32>,
    %c0_140 = arith.constant 0 : index
    %c0_141 = arith.constant 0 : index
    %604 = vector.load %arg13[%c0_140, %c0_141] : memref<2x8xf32, #tpu.memory_space<vmem>>, vector<2x8xf32>
    tpu.vector_store %arg13[%c0_140, %c0_141], %558 {strides = array<i32>} : memref<2x8xf32, #tpu.memory_space<vmem>>, vector<2x8xf32>,
    %c0_142 = arith.constant 0 : index
    %c0_143 = arith.constant 0 : index
    %605 = vector.load %arg14[%c0_142, %c0_143] : memref<2x8xf32, #tpu.memory_space<vmem>>, vector<2x8xf32>
    tpu.vector_store %arg14[%c0_142, %c0_143], %590 {strides = array<i32>} : memref<2x8xf32, #tpu.memory_space<vmem>>, vector<2x8xf32>,
    %c0_144 = arith.constant 0 : index
    %c0_145 = arith.constant 0 : index
    %606 = vector.load %arg15[%c0_144, %c0_145] : memref<2x8xf32, #tpu.memory_space<vmem>>, vector<2x8xf32>
    tpu.vector_store %arg15[%c0_144, %c0_145], %588 {strides = array<i32>} : memref<2x8xf32, #tpu.memory_space<vmem>>, vector<2x8xf32>,
    %c0_146 = arith.constant 0 : index
    %c0_147 = arith.constant 0 : index
    %607 = tpu.strided_load %arg11[%c0_146, %c0_147] {strides = array<i32: 2, 1>} : memref<16x8xf32, #tpu.memory_space<vmem>>, vector<8x8xf32>
    %c0_148 = arith.constant 0 : index
    %c0_149 = arith.constant 0 : index
    %c0_150 = arith.constant 0 : index
    %608 = tpu.strided_load %arg2[%c0_148, %c0_149, %c0_150] {strides = array<i32: 1, 2, 1>} : memref<1x16x32xf32, #tpu.memory_space<vmem>>, vector<1x8x32xf32>
    %609 = vector.shape_cast %608 : vector<1x8x32xf32> to vector<8x32xf32>
    %610 = tpu.transpose %607, [1, 0] : vector<8x8xf32> -> vector<8x8xf32>
    %611 = vector.extract_strided_slice %610 {offsets = [1, 0], sizes = [7, 8], strides = [1, 1]} : vector<8x8xf32> to vector<7x8xf32>
    %c0_151 = arith.constant 0 : index
    %c0_152 = arith.constant 0 : index
    %c0_153 = arith.constant 0 : index
    %612 = vector.load %arg9[%c0_151, %c0_152, %c0_153] : memref<2x7x32xf32, #tpu.memory_space<vmem>>, vector<1x7x32xf32>
    %613 = vector.shape_cast %612 : vector<1x7x32xf32> to vector<7x32xf32>
    %cst_154 = arith.constant dense<0.000000e+00> : vector<7x32xf32>
    %614 = tpu.matmul %611, %609, %cst_154 {dimension_numbers = #tpu.dot_dimension_numbers<[1], [0], [0], [1], [0, 0, 1, 1], [], []>} : vector<7x8xf32>, vector<8x32xf32>, vector<7x32xf32> -> vector<7x32xf32>
    %615 = arith.addf %613, %614 : vector<7x32xf32>
    %c0_155 = arith.constant 0 : index
    %c0_156 = arith.constant 0 : index
    %c0_157 = arith.constant 0 : index
    %616 = vector.load %arg9[%c0_155, %c0_156, %c0_157] : memref<2x7x32xf32, #tpu.memory_space<vmem>>, vector<1x7x32xf32>
    %617 = vector.shape_cast %616 : vector<1x7x32xf32> to vector<7x32xf32>
    %618 = vector.shape_cast %615 : vector<7x32xf32> to vector<1x7x32xf32>
    tpu.vector_store %arg9[%c0_155, %c0_156, %c0_157], %618 {strides = array<i32>} : memref<2x7x32xf32, #tpu.memory_space<vmem>>, vector<1x7x32xf32>,
    %c1 = arith.constant 1 : index
    %c0_158 = arith.constant 0 : index
    %619 = tpu.strided_load %arg11[%c1, %c0_158] {strides = array<i32: 2, 1>} : memref<16x8xf32, #tpu.memory_space<vmem>>, vector<8x8xf32>
    %c0_159 = arith.constant 0 : index
    %c1_160 = arith.constant 1 : index
    %c0_161 = arith.constant 0 : index
    %620 = tpu.strided_load %arg2[%c0_159, %c1_160, %c0_161] {strides = array<i32: 1, 2, 1>} : memref<1x16x32xf32, #tpu.memory_space<vmem>>, vector<1x8x32xf32>
    %621 = vector.shape_cast %620 : vector<1x8x32xf32> to vector<8x32xf32>
    %622 = tpu.transpose %619, [1, 0] : vector<8x8xf32> -> vector<8x8xf32>
    %623 = vector.extract_strided_slice %622 {offsets = [1, 0], sizes = [7, 8], strides = [1, 1]} : vector<8x8xf32> to vector<7x8xf32>
    %c1_162 = arith.constant 1 : index
    %c0_163 = arith.constant 0 : index
    %c0_164 = arith.constant 0 : index
    %624 = vector.load %arg9[%c1_162, %c0_163, %c0_164] : memref<2x7x32xf32, #tpu.memory_space<vmem>>, vector<1x7x32xf32>
    %625 = vector.shape_cast %624 : vector<1x7x32xf32> to vector<7x32xf32>
    %cst_165 = arith.constant dense<0.000000e+00> : vector<7x32xf32>
    %626 = tpu.matmul %623, %621, %cst_165 {dimension_numbers = #tpu.dot_dimension_numbers<[1], [0], [0], [1], [0, 0, 1, 1], [], []>} : vector<7x8xf32>, vector<8x32xf32>, vector<7x32xf32> -> vector<7x32xf32>
    %627 = arith.addf %625, %626 : vector<7x32xf32>
    %c1_166 = arith.constant 1 : index
    %c0_167 = arith.constant 0 : index
    %c0_168 = arith.constant 0 : index
    %628 = vector.load %arg9[%c1_166, %c0_167, %c0_168] : memref<2x7x32xf32, #tpu.memory_space<vmem>>, vector<1x7x32xf32>
    %629 = vector.shape_cast %628 : vector<1x7x32xf32> to vector<7x32xf32>
    %630 = vector.shape_cast %627 : vector<7x32xf32> to vector<1x7x32xf32>
    tpu.vector_store %arg9[%c1_166, %c0_167, %c0_168], %630 {strides = array<i32>} : memref<2x7x32xf32, #tpu.memory_space<vmem>>, vector<1x7x32xf32>,
    return
  }
  func.func @transform_0(%arg0: i32, %arg1: i32) -> (i32, i32, i32) {
    %c0_i32 = arith.constant 0 : i32
    %c0_i32_0 = arith.constant 0 : i32
    return %arg0, %arg1, %c0_i32 : i32, i32, i32
  }
  func.func @transform_1(%arg0: i32, %arg1: i32) -> (i32, i32) {
    %c0_i32 = arith.constant 0 : i32
    %c0_i32_0 = arith.constant 0 : i32
    %c0_i32_1 = arith.constant 0 : i32
    return %c0_i32, %c0_i32_0 : i32, i32
  }
  func.func @transform_2(%arg0: i32, %arg1: i32) -> (i32, i32) {
    %c0_i32 = arith.constant 0 : i32
    %c0_i32_0 = arith.constant 0 : i32
    %c0_i32_1 = arith.constant 0 : i32
    return %c0_i32, %c0_i32_0 : i32, i32
  }
  func.func @transform_3(%arg0: i32, %arg1: i32) -> (i32, i32) {
    %c0_i32 = arith.constant 0 : i32
    %c0_i32_0 = arith.constant 0 : i32
    %c0_i32_1 = arith.constant 0 : i32
    return %c0_i32, %c0_i32_0 : i32, i32
  }
  func.func @transform_4(%arg0: i32, %arg1: i32) -> (i32, i32) {
    %c0_i32 = arith.constant 0 : i32
    %c0_i32_0 = arith.constant 0 : i32
    %c0_i32_1 = arith.constant 0 : i32
    return %c0_i32, %c0_i32_0 : i32, i32
  }
  func.func @transform_5(%arg0: i32, %arg1: i32) -> (i32, i32) {
    %c0_i32 = arith.constant 0 : i32
    %c0_i32_0 = arith.constant 0 : i32
    %c0_i32_1 = arith.constant 0 : i32
    return %c0_i32, %c0_i32_0 : i32, i32
  }
  func.func @transform_6(%arg0: i32, %arg1: i32) -> (i32, i32) {
    %c0_i32 = arith.constant 0 : i32
    %c0_i32_0 = arith.constant 0 : i32
    %c0_i32_1 = arith.constant 0 : i32
    return %c0_i32, %c0_i32_0 : i32, i32
  }
  func.func @transform_7(%arg0: i32, %arg1: i32) -> (i32, i32, i32) {
    %c0_i32 = arith.constant 0 : i32
    %c0_i32_0 = arith.constant 0 : i32
    %c0_i32_1 = arith.constant 0 : i32
    return %arg0, %c0_i32, %c0_i32_0 : i32, i32, i32
  }
}

</mosaic_0001>

<bundles_post_ra>
// kernel: tpu_custom_call.1
= control target key start
LH: loop header
LB: loop body
LE: loop exit
PB: predicated region body
PF: predicated region fallthrough
CT: control target
= control target key end

     0   :  { %12 = vsyncpa [#allocation9], 0  ;;  %s4475_s0 = inlined_call_operand.hbm [shape: f32[1,32,32], index: 0, kind: input, shape index: {}]   ;;  %s4476_s1 = inlined_call_operand.hbm [shape: f32[32,32], index: 1, kind: input, shape index: {}]   ;;  %s4477_s2 = inlined_call_operand.hbm [shape: f32[8,32], index: 2, kind: input, shape index: {}]   ;;  %s4478_s3 = inlined_call_operand.vmem [shape: f32[1,32], index: 3, kind: input, shape index: {}]   ;;  %s4479_s4 = inlined_call_operand.vmem [shape: f32[8,32], index: 4, kind: input, shape index: {}]   ;;  %s4480_s5 = inlined_call_operand.vmem [shape: f32[8,32], index: 5, kind: input, shape index: {}]   ;;  %s4481_s6 = inlined_call_operand.vmem [shape: f32[1,32], index: 6, kind: input, shape index: {}]   ;;  %s4482_s7 = inlined_call_operand.vmem [shape: f32[2,7,32], index: 7, kind: output, shape index: {}]  }
   0x1   :  { %14 = vsyncpa [#allocation9 + $0x1], 0 }
   0x2   :  { %15 = vsyncpa [#allocation11], 0  ;;  %s3906_s24 = smov 0   ;;  %s3908_s25 = smov 0  }
   0x3   :  { %s3910_s26 = smov 0   ;;  %s3912_s27 = smov 0  }
   0x4   :  { %s3914_s28 = smov 0   ;;  %s3916_s29 = smov 0  }
   0x5 LB: > { %s3167_s30 = sadd.s32 4294967295, %s3851_s29   ;;  %p55_p0 = scmp.ne.s32.totalorder %s3835_s25, %s3831_s24  ;;  %s3851_s29 = sphi %s3916_s29, %s21_s29   ;;  %s3847_s28 = sphi %s3914_s28, %s4499_s28   ;;  %s3843_s27 = sphi %s3912_s27, %s4498_s27   ;;  %s3839_s26 = sphi %s3910_s26, %s4497_s26   ;;  %s3835_s25 = sphi %s3908_s25, %s4496_s25   ;;  %s3831_s24 = sphi %s3906_s24, %s4495_s24  }
   0x6   : > { %p3936_p1 = scmp.eq.s32.totalorder %s3167_s30, 0  ;;  %p3168_p2 = scmp.ge.s32.totalorder %s3851_s29, 1 }
   0x7   : > { %p218_p3 = scmp.lt.s32.totalorder %s3851_s29, 3  ;;  %s3853_s11 = smov [#allocation10]  }
   0x8   : > { %s4487_s8 = scalar_select %p3936_p1, 1, 0 }
   0x9   : > { %p3944_p4 = por %p3936_p1, %p55_p0  ;;  %p3948_p5 = pnand %p3168_p2, %p218_p3 }
   0xa   : > { %s230_s12 = sshll.u32 %s3853_s11, 4  ;;  %s3854_s14 = smov [#allocation12]   ;;  %s231_s12 = int_to_ptr.vmem [resolvable:$true] %s230_s12 }
   0xb   : > { %s4488_s9 = scalar_select %p3944_p4, 1, 0 }
   0xc   : > { %s4489_s10 = scalar_select %p3948_p5, 1, 0 }
   0xd   : > { %p3475_p6 = pneg %p3948_p5  ;;  %s244_s15 = sshll.u32 %s3854_s14, 4  ;;  %s3960_s15 = int_to_ptr.vmem [resolvable:$true] %s244_s15 }
   0xe   : > { %s3711_s18 = scalar_lea.hbm %s4476_s1, 512 }
   0xf   : > { %p3956_p7 = pnand %p3475_p6, %p3936_p1  ;;  %p3712_p8 = scmp.ne.s32.totalorder %s4476_s1, %s3711_s18 }
  0x10   : > { %p3718_p12 = scmp.lt.u32.totalorder %s3711_s18, %s4476_s1 }
  0x11   : > { %p3713_p9 = pneg %p3956_p7 }
  0x13   : > { %p3714_p10 = pnand %p3713_p9, %p3712_p8 }
  0x15   : > { %p3715_p11 = pneg %p3714_p10 }
  0x17   : > { %p3720_p13 = pnand %p3718_p12, %p3715_p11 }
  0x19   : > { %3723 = shalt.err (!%p3720_p13)
}
  0x1a   : > { %s3724_s23 = scalar_lea.vmem %s231_s12, 512  ;;  %p3732_p6 = scmp.lt.s32.totalorder %s231_s12, %s231_s12 }
  0x1b   : > { %p3725_p0 = scmp.ne.s32.totalorder %s231_s12, %s3724_s23  ;;  %p3733_p1 = scmp.lt.s32.totalorder %s3724_s23, %s3724_s23 }
  0x1d   : > { %p3727_p2 = pnand %p3725_p0, %p3713_p9  ;;  %p3734_p4 = por %p3733_p1, %p3732_p6 }
  0x1f   : > { %p3728_p3 = pneg %p3727_p2 }
  0x21   : > { %p3735_p5 = pnand %p3734_p4, %p3728_p3 }
  0x23   : > { %3738 = shalt.err (!%p3735_p5)
}
  0x24   : > { %s3855_s24 = smov 128   ;;  %s3856_s30 = smov 8  }
  0x25   : > { %3478 = dma.hbm_to_vmem [thread:$0]  (!%p3956_p7), %s4476_s1, 512, %s231_s12, [#allocation11], %s3855_s24, %s3855_s24, %s3856_s30  }
  0x26   : > { %s3739_s18 = scalar_lea.hbm %s4477_s2, 128 }
  0x27   : > { %p3740_p1 = scmp.ne.s32.totalorder %s4477_s2, %s3739_s18  ;;  %p3746_p8 = scmp.lt.u32.totalorder %s3739_s18, %s4477_s2 }
  0x29   : > { %p3742_p4 = pnand %p3740_p1, %p3713_p9 }
  0x2b   : > { %p3743_p5 = pneg %p3742_p4 }
  0x2d   : > { %p3748_p10 = pnand %p3746_p8, %p3743_p5 }
  0x2f   : > { %3751 = shalt.err (!%p3748_p10)
}
  0x30   : > { %s3752_s12 = scalar_lea.vmem %s3960_s15, 128  ;;  %p3760_p0 = scmp.lt.s32.totalorder %s3960_s15, %s3960_s15 }
  0x31   : > { %p3753_p11 = scmp.ne.s32.totalorder %s3960_s15, %s3752_s12  ;;  %p3761_p2 = scmp.lt.s32.totalorder %s3752_s12, %s3752_s12 }
  0x33   : > { %p3755_p12 = pnand %p3753_p11, %p3713_p9  ;;  %p3762_p3 = por %p3761_p2, %p3760_p0 }
  0x35   : > { %p3756_p13 = pneg %p3755_p12 }
  0x37   : > { %p3763_p6 = pnand %p3762_p3, %p3756_p13 }
  0x39   : > { %3766 = shalt.err (!%p3763_p6)
}
  0x3a   : > { %3481 = dma.hbm_to_vmem [thread:$0]  (!%p3956_p7), %s4477_s2, 128, %s3960_s15, [#allocation11]  }
  0x3b   : > { %s30_s14 = sadd.s32 1, %s3847_s28  ;;  %s42_s16 = sadd.s32 1, %s3839_s26 }
  0x3c   : > { %p31_p9 = scmp.ge.s32.totalorder %s30_s14, 2  ;;  %p49_p1 = scmp.ne.s32.totalorder %s3839_s26, %s3835_s25 }
  0x3d   : > { %p50_p4 = scmp.eq.s32.totalorder %s3851_s29, 0  ;;  %p3488_p5 = scmp.lt.s32.totalorder %s3851_s29, 2 }
  0x3e   : > { %s4501_s14 = smov (%p31_p9, %s30_s14), 0  ;;  %s267_s13 = sand.u32 1, %s3839_s26  }
  0x3f   : > { %p51_p8 = por %p50_p4, %p49_p1  ;;  %s38_s17 = ssub.s32 %s3847_s28, %s4501_s14 }
  0x40   : > { %p40_p10 = scmp.eq.s32.totalorder %s38_s17, 0  ;;  %s3172_s18 = sshll.u32 %s267_s13, 4 }
  0x41   : > { %s3233_s19 = sshll.u32 %s3847_s28, 8  ;;  %s271_s12 = scalar_lea.vmem [#allocation8], %s3172_s18 }
  0x42   : > { %s4025_s20 = scalar_select %p40_p10, %s3839_s26, %s42_s16  }
  0x43   : > { %s4030_s22 = scalar_lea.hbm %s4475_s0, %s3233_s19  ;;  %s280_s23 = sshll.u32 %s271_s12, 4  ;;  %s4032_s23 = int_to_ptr.vmem [resolvable:$true] %s280_s23 }
  0x44   : > { %p4036_p7 = pnand %p3488_p5, %p51_p8  ;;  %s4040_s16 = scalar_lea.sflag [#allocation9], %s267_s13 }
  0x45   : > { %s3767_s17 = scalar_lea.hbm %s4030_s22, 256  ;;  %s3772_s21 = scalar_lea.hbm %s4475_s0, 512 }
  0x46   : > { %p3768_p11 = scmp.ne.s32.totalorder %s4030_s22, %s3767_s17  ;;  %p3769_p12 = pneg %p4036_p7 }
  0x47   : > { %p3773_p2 = scmp.lt.u32.totalorder %s4030_s22, %s4475_s0  ;;  %p3774_p3 = scmp.lt.u32.totalorder %s3772_s21, %s3767_s17 }
  0x48   : > { %p3770_p13 = pnand %p3769_p12, %p3768_p11  ;;  %p3776_p9 = scmp.lt.u32.totalorder %s3767_s17, %s4030_s22 }
  0x49   : > { %p3775_p6 = por %p3774_p3, %p3773_p2 }
  0x4a   : > { %p3771_p0 = pneg %p3770_p13 }
  0x4b   : > { %p3777_p1 = por %p3776_p9, %p3775_p6 }
  0x4d   : > { %p3778_p4 = pnand %p3777_p1, %p3771_p0 }
  0x4f   : > { %3781 = shalt.err (!%p3778_p4)
}
  0x50   : > { %s3782_s13 = scalar_lea.vmem %s4032_s23, 256  ;;  %s3857_s18 = smov [#allocation8]  }
  0x51   : > { %p3783_p5 = scmp.ne.s32.totalorder %s4032_s23, %s3782_s13  ;;  %s3787_s19 = sshll.u32 %s3857_s18, 4  ;;  %s3788_s19 = int_to_ptr.vmem [resolvable:$false] %s3787_s19 }
  0x52   : > { %s3789_s15 = scalar_lea.vmem %s3788_s19, 512  ;;  %p3790_p11 = scmp.lt.s32.totalorder %s4032_s23, %s3788_s19 }
  0x53   : > { %p3785_p8 = pnand %p3783_p5, %p3769_p12  ;;  %p3791_p13 = scmp.lt.s32.totalorder %s3789_s15, %s3782_s13 }
  0x55   : > { %p3786_p10 = pneg %p3785_p8  ;;  %p3792_p2 = por %p3791_p13, %p3790_p11 }
  0x57   : > { %p3793_p3 = pnand %p3792_p2, %p3786_p10 }
  0x59   : > { %3796 = shalt.err (!%p3793_p3)
}
  0x5a   : > { %3485 = dma.hbm_to_vmem [thread:$0]  (!%p4036_p7), %s4030_s22, 256, %s4032_s23, %s4040_s16, %s3855_s24, %s3855_s24, %s3856_s30  }
  0x5b   : > { %p4492_p12 = scmp.ne.s32.totalorder %s4489_s10, 0 }
  0x5c   : > { %s294_s17 = sand.u32 (!%p4492_p12), 1, %s3835_s25   ;;  %p4493_p0 = scmp.ne.s32.totalorder (!%p4492_p12), %s4488_s9, 0 }
  0x5d   : > { %292 = sbr.rel (%p4492_p12) target bundleno = 7248 (0x1c50), region = 48  ;;  %s3176_s21 = sshll.u32 (!%p4492_p12), %s294_s17, 4 }
  0x5e   : > { %s295_s12 = scalar_lea.sflag (!%p4492_p12), [#allocation9], %s294_s17  ;;  %s4074_s13 = scalar_lea.vmem (!%p4492_p12), [#allocation8], %s3176_s21 }
  0x64   : > { %3822 = dma.done.wait (%p4493_p0), %s295_s12, 256  }
  0x65   : > { %3824 = vsyncadd (%p4493_p0), %s295_s12, 4294967040  ;;  %p4494_p6 = scmp.ne.s32.totalorder %s4487_s8, 0 }
  0x67   : > { %3826 = dma.done.wait (%p4494_p6), [#allocation11], 640  }
  0x68   : > { %3828 = vsyncadd (%p4494_p6), [#allocation11], 4294966656  ;;  %p3179_p7 = scmp.ne.s32.totalorder %s3843_s27, 0 }
  0x69   : > { %vm348_vm0 = vcmask (!%p3179_p7), 58368   ;;  %vm353_vm1 = vcmask (!%p3179_p7), 260096   ;;  %v3858_v0 = vmov (!%p3179_p7), 0.0  }
  0x6a   : > { %347 = sbr.rel (%p3179_p7) target bundleno = 113 (0x71), region = 64  ;;  %349 = vst.msk [vmem:[#allocation4] sm:$0x3] (!%p3179_p7), %vm348_vm0, %v3858_v0  ;;  %350 = vst.msk [vmem:[#allocation5] sm:$0x3] (!%p3179_p7), %vm348_vm0, %v3858_v0 }
  0x6b   : > { %351 = vst.msk [vmem:[#allocation6] sm:$0x3] (!%p3179_p7), %vm348_vm0, %v3858_v0  ;;  %352 = vst.msk [vmem:[#allocation7] sm:$0x3] (!%p3179_p7), %vm348_vm0, %v3858_v0 }
  0x6c   : > { %354 = vst.msk [vmem:[%s4482_s7] sm:$0x7f] (!%p3179_p7), %vm353_vm1, %v3858_v0  ;;  %355 = vst.msk [vmem:[%s4482_s7 + $0x8] sm:$0x7f] (!%p3179_p7), %vm353_vm1, %v3858_v0 }
  0x71 PF: > { %v362_v1 = vld [vmem:[#allocation10] sm:$0xff]  ;;  %v363_v2 = vld [vmem:[#allocation10 + $0x8] sm:$0xff]  ;;  %v364_v3 = vld [vmem:[#allocation10 + $0x10] sm:$0xff]  ;;  %vm373_vm2 = vcmask 261120   ;;  %v3859_v7 = vmov 0.0   ;;  %vm3860_vm3 = vmmov 0  }
  0x72   : > { %v3433_v4 = vpack.c.bf16 %v363_v2, %v362_v1  ;;  %v365_v5 = vld [vmem:[#allocation10 + $0x18] sm:$0xff]  ;;  %v360_v6 = vld [vmem:[%s4074_s13] sm:$0xff]  ;;  %3303 = vmatprep.subr.mxu1 %v3859_v7  ;;  %3305 = vmatprep.mubr.msk.f32.mxu1 %vm3860_vm3, %v3859_v7  ;;  %vm462_vm4 = vcmask 64512   ;;  %s3861_s22 = smov 112   ;;  %s3862_s23 = smov 8   ;;  %vm760_vm5 = vcmask 58368  }
  0x73   : > { %v3437_v8 = vpack.c.bf16 %v365_v5, %v364_v3  ;;  %3300 = vmatprep.mubr.msk.f32.mxu0 %vm373_vm2, %v360_v6  ;;  %v4096_v9 = vld [vmem:[#allocation12] sm:$0xff]  ;;  %v457_v10 = vld [vmem:[#allocation4] sm:$0x3]  ;;  %v458_v22 = vld [vmem:[#allocation5] sm:$0x3]  ;;  %s3863_s18 = smov 16  }
  0x74   : > { %3434 = vmatprep.subr.bf16.mxu0 %v3433_v4  ;;  %3304 = vmatpush3.msra.mxu1 %v4096_v9  ;;  %v361_v11 = vld [vmem:[%s4074_s13 + $0x8] sm:$0xff]  ;;  %s3864_s19 = smov 104   ;;  %vm749_vm6 = vcmask 255168   ;;  %s3865_s10 = smov 120   ;;  %vm2956_vm7 = vcmask 260096  }
  0x75   : > { %3436 = vmatpush3.bf16.msra.mxu0 %v3433_v4  ;;  %3306 = vmatmul.mubr.msk.f32.vlgmr.msra.gmra.mrb[0].mxu1 %vm462_vm4, %v457_v10  ;;  %v3180_v14 = vld [vmem:[%s4478_s3] ss:$0 sm:$0xff]  ;;  %v459_v39 = vld [vmem:[#allocation6] sm:$0x3]  ;;  %v460_v50 = vld [vmem:[#allocation7] sm:$0x3] }
  0x76   : > { %3438 = vmatprep.subr.bf16.mxu0 %v3437_v8  ;;  %3308 = vmatprep.subr.mxu1 %v3859_v7  ;;  %v4121_v33 = vld [vmem:[%s4479_s4] sm:$0xff] }
  0x77   : > { %3310 = vmatprep.mubr.msk.f32.mxu1 %vm3860_vm3, %v3859_v7  ;;  %3309 = vmatpush3.msra.mxu1 %v4121_v33  ;;  %v4130_v37 = vld [vmem:[%s4480_s5] sm:$0xff] }
  0x78   : > { %3313 = vmatprep.subr.mxu1 %v3859_v7  ;;  %v4150_v44 = vld [vmem:[%s4481_s6] ss:$0 sm:$0xff] }
  0x79   : > { %3440 = vmatpush3.bf16.msra.mxu0 %v3437_v8 }
  0x7a   : > { %3318 = vmatprep.subr.mxu0 %v3859_v7 }
  0x7c   : > { %3301 = vmatmul.mubr.msk.f32.vlgmr.msra.gmra.mrb[0].mxu0 %vm373_vm2, %v361_v11 }
  0x7d   : > { %3319 = vmatpush3.msra.mxu0 %v4096_v9  ;;  %3320 = vmatprep.mubr.msk.f32.mxu0 %vm3860_vm3, %v3859_v7 }
  0x7e   : > { %3333 = vmatprep.subr.mxu0 %v3859_v7 }
 0x148   : > { %v532_v12 = vpop.f32.mrb[0].mxu1 }
 0x149   : > { %v3307_v13 = vpop.f32.mrb[1].mxu1 }
 0x14f   : > { %v3302_v15 = vpop.f32.mrb[0].mxu0 }
 0x150   : > { %v452_v16 = vadd.f32 %v3302_v15, %v3180_v14  ;;  %v446_v17 = vpop.f32.mrb[1].mxu0 }
 0x151   : > { %v447_v18 = vadd.f32 %v3180_v14, %v446_v17 }
 0x152   : > { %456 = vst.msk [vmem:[#allocation2 + $0x8] sm:$0xff] %vm373_vm2, %v452_v16 }
 0x153   : > { %455 = vst.msk [vmem:[#allocation2] sm:$0xff] %vm373_vm2, %v447_v18 }
 0x15a   : > { %v461_v19 = vld [vmem:[#allocation2] sm:$0x3]  ;;  %v772_v40 = vld [vmem:[#allocation2 + $0x2] sm:$0x3]  ;;  %v1066_v16 = vld [vmem:[#allocation2 + $0x4] sm:$0x3] }
 0x15b   : > { %v536_v20 = vadd.f32 %v532_v12, %v461_v19 }
 0x15d   : > { %3551 = vtanh.f32 %v536_v20  ;;  %v3184_v23 = vmul.f32 -1.442695, %v536_v20 }
 0x15f   : > { %3553 = vpow2.f32 %v3184_v23 }
 0x167   : > { %v3552_v21 = vpop.eup %3551 }
 0x168   : > { %550 = vrot.lane.b32.xlu0 %v3552_v21, %s3861_s22 }
 0x169   : > { %v3554_v24 = vpop.eup %3553 }
 0x16a   : > { %v540_v25 = vadd.f32 1.0, %v3554_v24 }
 0x16c   : > { %545 = vrot.lane.b32.xlu0 %v458_v22, %s3862_s23  ;;  %3555 = vrcp.f32 %v540_v25 }
 0x176   : > { %v3556_v26 = vpop.eup %3555 }
 0x1da   : > { %v551_v27 = vpop.permute.xlu0 %550 }
 0x1db   : > { %v553_v28 = vmul.f32 %v3556_v26, %v551_v27 }
 0x1dd   : > { %555 = vrot.lane.b32.xlu1 %v553_v28, %s3862_s23 }
 0x1de   : > { %v546_v29 = vpop.permute.xlu0 %545 }
 0x1df   : > { %v548_v30 = vmul.f32 %v3556_v26, %v546_v29 }
 0x24f   : > { %v556_v31 = vpop.permute.xlu1 %555 }
 0x250   : > { %v558_v32 = vadd.f32 %v556_v31, %v548_v30 }
 0x252   : > { %3557 = vtanh.f32 %v558_v32 }
 0x25c   : > { %v3558_v34 = vpop.eup %3557 }
 0x25d   : > { %561 = vrot.lane.b32.xlu1 %v3558_v34, %s3863_s18 }
 0x2cf   : > { %v562_v35 = vpop.permute.xlu1 %561 }
 0x2d0   : > { %v564_v36 = vmul.f32 %v3556_v26, %v562_v35 }
 0x2d2   : > { %566 = vrot.lane.b32.xlu0 %v564_v36, %s3864_s19 }
 0x344   : > { %v567_v38 = vpop.permute.xlu0 %566 }
 0x345   : > { %3311 = vmatmul.mubr.msk.f32.vlgmr.msra.gmra.mrb[2].mxu1 %vm462_vm4, %v567_v38  ;;  %3321 = vmatmul.mubr.msk.f32.vlgmr.msra.gmra.mrb[2].mxu0 %vm462_vm4, %v567_v38 }
 0x346   : > { %3314 = vmatpush3.msra.mxu1 %v4130_v37  ;;  %3315 = vmatprep.mubr.msk.f32.mxu1 %vm3860_vm3, %v3859_v7 }
 0x347   : > { %3323 = vmatprep.subr.mxu1 %v3859_v7  ;;  %3334 = vmatpush3.msra.mxu0 %v4096_v9 }
 0x348   : > { %3335 = vmatprep.mubr.msk.f32.mxu0 %vm3860_vm3, %v3859_v7  ;;  %3338 = vmatprep.subr.mxu0 %v3859_v7 }
 0x34d   : > { %3316 = vmatmul.mubr.msk.f32.vlgmr.msra.gmra.mrb[2].mxu1 %vm462_vm4, %v459_v39 }
 0x34e   : > { %3324 = vmatpush3.msra.mxu1 %v4121_v33  ;;  %3325 = vmatprep.mubr.msk.f32.mxu1 %vm3860_vm3, %v3859_v7 }
 0x34f   : > { %3328 = vmatprep.subr.mxu1 %v3859_v7 }
 0x418   : > { %v839_v41 = vpop.f32.mrb[2].mxu0 }
 0x419   : > { %v843_v42 = vadd.f32 %v839_v41, %v772_v40  ;;  %v3322_v43 = vpop.f32.mrb[3].mxu0 }
 0x41b   : > { %3559 = vtanh.f32 %v843_v42  ;;  %v3190_v51 = vmul.f32 -1.442695, %v843_v42 }
 0x420   : > { %v716_v45 = vpop.f32.mrb[2].mxu1 }
 0x421   : > { %v3441_v46 = vadd.f32 %v4150_v44, %v716_v45  ;;  %v3317_v47 = vpop.f32.mrb[3].mxu1 }
 0x423   : > { %3561 = vtanh.f32 %v3441_v46  ;;  %v3188_v52 = vmul.f32 -1.442695, %v3441_v46 }
 0x424   : > { %3563 = vpow2.f32 %v3190_v51 }
 0x425   : > { %v3560_v48 = vpop.eup %3559  ;;  %3565 = vpow2.f32 %v3188_v52 }
 0x426   : > { %853 = vrot.lane.b32.xlu1 %v3560_v48, %s3861_s22 }
 0x42d   : > { %v3562_v49 = vpop.eup %3561 }
 0x42e   : > { %734 = vrot.lane.b32.xlu0 %v3562_v49, %s3861_s22  ;;  %v3564_v53 = vpop.eup %3563 }
 0x42f   : > { %v847_v54 = vadd.f32 1.0, %v3564_v53  ;;  %v3566_v55 = vpop.eup %3565 }
 0x430   : > { %v724_v56 = vadd.f32 1.0, %v3566_v55 }
 0x431   : > { %3567 = vrcp.f32 %v847_v54  ;;  %v1360_v54 = vld [vmem:[#allocation2 + $0x6] sm:$0x3] }
 0x432   : > { %729 = vrot.lane.b32.xlu0 %v460_v50, %s3862_s23  ;;  %3569 = vrcp.f32 %v724_v56 }
 0x43b   : > { %v3568_v57 = vpop.eup %3567 }
 0x43c   : > { %v3570_v60 = vpop.eup %3569  ;;  %v851_v63 = vmul.f32 %v3568_v57, %v558_v32 }
 0x498   : > { %v854_v58 = vpop.permute.xlu1 %853 }
 0x499   : > { %v856_v59 = vmul.f32 %v3568_v57, %v854_v58 }
 0x49b   : > { %858 = vrot.lane.b32.xlu1 %v856_v59, %s3862_s23 }
 0x4a0   : > { %v735_v61 = vpop.permute.xlu0 %734 }
 0x4a1   : > { %v737_v62 = vmul.f32 %v3570_v60, %v735_v61 }
 0x4a3   : > { %739 = vrot.lane.b32.xlu1 %v737_v62, %s3862_s23 }
 0x4a4   : > { %v730_v2 = vpop.permute.xlu0 %729 }
 0x4a5   : > { %v732_v3 = vmul.f32 %v3570_v60, %v730_v2 }
 0x50d   : > { %v859_v0 = vpop.permute.xlu1 %858 }
 0x50e   : > { %v861_v1 = vadd.f32 %v859_v0, %v851_v63 }
 0x510   : > { %3571 = vtanh.f32 %v861_v1 }
 0x515   : > { %v740_v4 = vpop.permute.xlu1 %739 }
 0x516   : > { %v742_v5 = vadd.f32 %v740_v4, %v732_v3 }
 0x518   : > { %3573 = vtanh.f32 %v742_v5 }
 0x51a   : > { %v3572_v6 = vpop.eup %3571 }
 0x51b   : > { %864 = vrot.lane.b32.xlu0 %v3572_v6, %s3863_s18 }
 0x522   : > { %v3574_v8 = vpop.eup %3573 }
 0x523   : > { %745 = vrot.lane.b32.xlu1 %v3574_v8, %s3863_s18 }
 0x58d   : > { %v865_v10 = vpop.permute.xlu0 %864 }
 0x58e   : > { %v867_v11 = vmul.f32 %v3568_v57, %v865_v10 }
 0x590   : > { %869 = vrot.lane.b32.xlu0 %v867_v11, %s3864_s19 }
 0x595   : > { %v746_v12 = vpop.permute.xlu1 %745 }
 0x596   : > { %v4161_v13 = vmul.f32 %v3570_v60, %v746_v12 }
 0x598   : > { %945 = vrot.lane.b32.xlu1 %v4161_v13, %s3864_s19 }
 0x602   : > { %v870_v14 = vpop.permute.xlu0 %869 }
 0x603   : > { %3326 = vmatmul.mubr.msk.f32.vlgmr.msra.gmra.mrb[4].mxu1 %vm462_vm4, %v870_v14  ;;  %3336 = vmatmul.mubr.msk.f32.vlgmr.msra.gmra.mrb[4].mxu0 %vm462_vm4, %v870_v14 }
 0x604   : > { %3329 = vmatpush3.msra.mxu1 %v4130_v37  ;;  %3330 = vmatprep.mubr.msk.f32.mxu1 %vm3860_vm3, %v3859_v7 }
 0x605   : > { %3348 = vmatprep.subr.mxu1 %v3859_v7  ;;  %3339 = vmatpush3.msra.mxu0 %v4121_v33 }
 0x606   : > { %3340 = vmatprep.mubr.msk.f32.mxu0 %vm3860_vm3, %v3859_v7  ;;  %3343 = vmatprep.subr.mxu0 %v3859_v7 }
 0x60a   : > { %v946_v15 = vpop.permute.xlu1 %945 }
 0x60b   : > { %3331 = vmatmul.mubr.msk.f32.vlgmr.msra.gmra.mrb[4].mxu1 %vm462_vm4, %v946_v15 }
 0x60c   : > { %3349 = vmatpush3.msra.mxu1 %v4096_v9  ;;  %3350 = vmatprep.mubr.msk.f32.mxu1 %vm3860_vm3, %v3859_v7 }
 0x60d   : > { %3353 = vmatprep.subr.mxu1 %v3859_v7 }
 0x6d6   : > { %v1133_v17 = vpop.f32.mrb[4].mxu0 }
 0x6d7   : > { %v1137_v18 = vadd.f32 %v1133_v17, %v1066_v16  ;;  %v3337_v19 = vpop.f32.mrb[5].mxu0 }
 0x6d9   : > { %3575 = vtanh.f32 %v1137_v18  ;;  %v3195_v25 = vmul.f32 -1.442695, %v1137_v18 }
 0x6de   : > { %v1015_v20 = vpop.f32.mrb[4].mxu1 }
 0x6df   : > { %v3442_v21 = vadd.f32 %v4150_v44, %v1015_v20  ;;  %v3332_v22 = vpop.f32.mrb[5].mxu1 }
 0x6e1   : > { %3577 = vtanh.f32 %v3442_v21  ;;  %v3193_v26 = vmul.f32 -1.442695, %v3442_v21 }
 0x6e2   : > { %3579 = vpow2.f32 %v3195_v25 }
 0x6e3   : > { %v3576_v23 = vpop.eup %3575  ;;  %3581 = vpow2.f32 %v3193_v26 }
 0x6e4   : > { %1147 = vrot.lane.b32.xlu0 %v3576_v23, %s3861_s22 }
 0x6eb   : > { %v3578_v24 = vpop.eup %3577 }
 0x6ec   : > { %1029 = vrot.lane.b32.xlu1 %v3578_v24, %s3861_s22  ;;  %v3580_v27 = vpop.eup %3579 }
 0x6ed   : > { %v1141_v28 = vadd.f32 1.0, %v3580_v27  ;;  %v3582_v29 = vpop.eup %3581 }
 0x6ee   : > { %v1023_v30 = vadd.f32 1.0, %v3582_v29 }
 0x6ef   : > { %3583 = vrcp.f32 %v1141_v28  ;;  %v1654_v28 = vld [vmem:[#allocation2 + $0x8] sm:$0x3] }
 0x6f0   : > { %3585 = vrcp.f32 %v1023_v30 }
 0x6f9   : > { %v3584_v31 = vpop.eup %3583 }
 0x6fa   : > { %v3586_v35 = vpop.eup %3585  ;;  %v1145_v39 = vmul.f32 %v3584_v31, %v861_v1 }
 0x6fb   : > { %v1027_v42 = vmul.f32 %v3586_v35, %v742_v5 }
 0x756   : > { %v1148_v32 = vpop.permute.xlu0 %1147 }
 0x757   : > { %v1150_v34 = vmul.f32 %v3584_v31, %v1148_v32 }
 0x759   : > { %1152 = vrot.lane.b32.xlu0 %v1150_v34, %s3862_s23 }
 0x75e   : > { %v1030_v36 = vpop.permute.xlu1 %1029 }
 0x75f   : > { %v1032_v38 = vmul.f32 %v3586_v35, %v1030_v36 }
 0x761   : > { %1034 = vrot.lane.b32.xlu1 %v1032_v38, %s3862_s23 }
 0x7cb   : > { %v1153_v40 = vpop.permute.xlu0 %1152 }
 0x7cc   : > { %v1155_v41 = vadd.f32 %v1153_v40, %v1145_v39 }
 0x7ce   : > { %3587 = vtanh.f32 %v1155_v41 }
 0x7d3   : > { %v1035_v43 = vpop.permute.xlu1 %1034 }
 0x7d4   : > { %v1037_v45 = vadd.f32 %v1035_v43, %v1027_v42 }
 0x7d6   : > { %3589 = vtanh.f32 %v1037_v45 }
 0x7d8   : > { %v3588_v46 = vpop.eup %3587 }
 0x7d9   : > { %1158 = vrot.lane.b32.xlu0 %v3588_v46, %s3863_s18 }
 0x7e0   : > { %v3590_v47 = vpop.eup %3589 }
 0x7e1   : > { %1040 = vrot.lane.b32.xlu1 %v3590_v47, %s3863_s18 }
 0x84b   : > { %v1159_v48 = vpop.permute.xlu0 %1158 }
 0x84c   : > { %v1161_v49 = vmul.f32 %v3584_v31, %v1159_v48 }
 0x84e   : > { %1163 = vrot.lane.b32.xlu0 %v1161_v49, %s3864_s19 }
 0x853   : > { %v1041_v50 = vpop.permute.xlu1 %1040 }
 0x854   : > { %v4188_v51 = vmul.f32 %v3586_v35, %v1041_v50 }
 0x856   : > { %1239 = vrot.lane.b32.xlu1 %v4188_v51, %s3864_s19 }
 0x8c0   : > { %v1164_v52 = vpop.permute.xlu0 %1163 }
 0x8c1   : > { %3341 = vmatmul.mubr.msk.f32.vlgmr.msra.gmra.mrb[6].mxu0 %vm462_vm4, %v1164_v52  ;;  %3351 = vmatmul.mubr.msk.f32.vlgmr.msra.gmra.mrb[6].mxu1 %vm462_vm4, %v1164_v52 }
 0x8c2   : > { %3344 = vmatpush3.msra.mxu0 %v4130_v37  ;;  %3345 = vmatprep.mubr.msk.f32.mxu0 %vm3860_vm3, %v3859_v7 }
 0x8c3   : > { %3363 = vmatprep.subr.mxu0 %v3859_v7  ;;  %3354 = vmatpush3.msra.mxu1 %v4121_v33 }
 0x8c4   : > { %3355 = vmatprep.mubr.msk.f32.mxu1 %vm3860_vm3, %v3859_v7  ;;  %3358 = vmatprep.subr.mxu1 %v3859_v7 }
 0x8c8   : > { %v1240_v53 = vpop.permute.xlu1 %1239 }
 0x8c9   : > { %3346 = vmatmul.mubr.msk.f32.vlgmr.msra.gmra.mrb[6].mxu0 %vm462_vm4, %v1240_v53 }
 0x8ca   : > { %3364 = vmatpush3.msra.mxu0 %v4096_v9  ;;  %3365 = vmatprep.mubr.msk.f32.mxu0 %vm3860_vm3, %v3859_v7 }
 0x8cb   : > { %3368 = vmatprep.subr.mxu0 %v3859_v7 }
 0x994   : > { %v1427_v55 = vpop.f32.mrb[6].mxu1 }
 0x995   : > { %v1431_v56 = vadd.f32 %v1427_v55, %v1360_v54  ;;  %v3352_v57 = vpop.f32.mrb[7].mxu1 }
 0x997   : > { %3591 = vtanh.f32 %v1431_v56  ;;  %v3200_v63 = vmul.f32 -1.442695, %v1431_v56 }
 0x99c   : > { %v1309_v58 = vpop.f32.mrb[6].mxu0 }
 0x99d   : > { %v3443_v59 = vadd.f32 %v4150_v44, %v1309_v58  ;;  %v3347_v60 = vpop.f32.mrb[7].mxu0 }
 0x99f   : > { %3593 = vtanh.f32 %v3443_v59  ;;  %v3198_v0 = vmul.f32 -1.442695, %v3443_v59 }
 0x9a0   : > { %3595 = vpow2.f32 %v3200_v63 }
 0x9a1   : > { %v3592_v61 = vpop.eup %3591  ;;  %3597 = vpow2.f32 %v3198_v0 }
 0x9a2   : > { %1441 = vrot.lane.b32.xlu0 %v3592_v61, %s3861_s22 }
 0x9a9   : > { %v3594_v62 = vpop.eup %3593 }
 0x9aa   : > { %1323 = vrot.lane.b32.xlu1 %v3594_v62, %s3861_s22  ;;  %v3596_v1 = vpop.eup %3595 }
 0x9ab   : > { %v1435_v2 = vadd.f32 1.0, %v3596_v1  ;;  %v3598_v3 = vpop.eup %3597 }
 0x9ac   : > { %v1317_v4 = vadd.f32 1.0, %v3598_v3  ;;  %v1948_v3 = vld [vmem:[#allocation2 + $0xa] sm:$0x3] }
 0x9ad   : > { %3599 = vrcp.f32 %v1435_v2 }
 0x9ae   : > { %3601 = vrcp.f32 %v1317_v4 }
 0x9b7   : > { %v3600_v5 = vpop.eup %3599 }
 0x9b8   : > { %v3602_v10 = vpop.eup %3601  ;;  %v1439_v14 = vmul.f32 %v3600_v5, %v1155_v41 }
 0x9b9   : > { %v1321_v17 = vmul.f32 %v3602_v10, %v1037_v45 }
 0xa14   : > { %v1442_v6 = vpop.permute.xlu0 %1441 }
 0xa15   : > { %v1444_v8 = vmul.f32 %v3600_v5, %v1442_v6 }
 0xa17   : > { %1446 = vrot.lane.b32.xlu0 %v1444_v8, %s3862_s23 }
 0xa1c   : > { %v1324_v11 = vpop.permute.xlu1 %1323 }
 0xa1d   : > { %v1326_v12 = vmul.f32 %v3602_v10, %v1324_v11 }
 0xa1f   : > { %1328 = vrot.lane.b32.xlu1 %v1326_v12, %s3862_s23 }
 0xa89   : > { %v1447_v15 = vpop.permute.xlu0 %1446 }
 0xa8a   : > { %v1449_v16 = vadd.f32 %v1447_v15, %v1439_v14 }
 0xa8c   : > { %3603 = vtanh.f32 %v1449_v16 }
 0xa91   : > { %v1329_v18 = vpop.permute.xlu1 %1328 }
 0xa92   : > { %v1331_v19 = vadd.f32 %v1329_v18, %v1321_v17 }
 0xa94   : > { %3605 = vtanh.f32 %v1331_v19 }
 0xa96   : > { %v3604_v20 = vpop.eup %3603 }
 0xa97   : > { %1452 = vrot.lane.b32.xlu0 %v3604_v20, %s3863_s18 }
 0xa9e   : > { %v3606_v21 = vpop.eup %3605 }
 0xa9f   : > { %1334 = vrot.lane.b32.xlu1 %v3606_v21, %s3863_s18 }
 0xb09   : > { %v1453_v22 = vpop.permute.xlu0 %1452 }
 0xb0a   : > { %v1455_v23 = vmul.f32 %v3600_v5, %v1453_v22 }
 0xb0c   : > { %1457 = vrot.lane.b32.xlu0 %v1455_v23, %s3864_s19 }
 0xb11   : > { %v1335_v24 = vpop.permute.xlu1 %1334 }
 0xb12   : > { %v4215_v25 = vmul.f32 %v3602_v10, %v1335_v24 }
 0xb14   : > { %1533 = vrot.lane.b32.xlu1 %v4215_v25, %s3864_s19 }
 0xb7e   : > { %v1458_v26 = vpop.permute.xlu0 %1457 }
 0xb7f   : > { %3356 = vmatmul.mubr.msk.f32.vlgmr.msra.gmra.mrb[8].mxu1 %vm462_vm4, %v1458_v26  ;;  %3366 = vmatmul.mubr.msk.f32.vlgmr.msra.gmra.mrb[8].mxu0 %vm462_vm4, %v1458_v26 }
 0xb80   : > { %3359 = vmatpush3.msra.mxu1 %v4130_v37  ;;  %3360 = vmatprep.mubr.msk.f32.mxu1 %vm3860_vm3, %v3859_v7 }
 0xb81   : > { %3378 = vmatprep.subr.mxu1 %v3859_v7  ;;  %3369 = vmatpush3.msra.mxu0 %v4121_v33 }
 0xb82   : > { %3370 = vmatprep.mubr.msk.f32.mxu0 %vm3860_vm3, %v3859_v7  ;;  %3373 = vmatprep.subr.mxu0 %v3859_v7 }
 0xb86   : > { %v1534_v27 = vpop.permute.xlu1 %1533 }
 0xb87   : > { %3361 = vmatmul.mubr.msk.f32.vlgmr.msra.gmra.mrb[8].mxu1 %vm462_vm4, %v1534_v27 }
 0xb88   : > { %3379 = vmatpush3.msra.mxu1 %v4096_v9  ;;  %3380 = vmatprep.mubr.msk.f32.mxu1 %vm3860_vm3, %v3859_v7 }
 0xb89   : > { %3383 = vmatprep.subr.mxu1 %v3859_v7 }
 0xc52   : > { %v1721_v29 = vpop.f32.mrb[8].mxu0 }
 0xc53   : > { %v1725_v30 = vadd.f32 %v1721_v29, %v1654_v28  ;;  %v3367_v31 = vpop.f32.mrb[9].mxu0 }
 0xc55   : > { %3607 = vtanh.f32 %v1725_v30  ;;  %v3205_v39 = vmul.f32 -1.442695, %v1725_v30 }
 0xc5a   : > { %v1603_v32 = vpop.f32.mrb[8].mxu1 }
 0xc5b   : > { %v3444_v34 = vadd.f32 %v4150_v44, %v1603_v32  ;;  %v3362_v35 = vpop.f32.mrb[9].mxu1 }
 0xc5d   : > { %3609 = vtanh.f32 %v3444_v34  ;;  %v3203_v40 = vmul.f32 -1.442695, %v3444_v34 }
 0xc5e   : > { %3611 = vpow2.f32 %v3205_v39 }
 0xc5f   : > { %v3608_v36 = vpop.eup %3607  ;;  %3613 = vpow2.f32 %v3203_v40 }
 0xc60   : > { %1735 = vrot.lane.b32.xlu0 %v3608_v36, %s3861_s22 }
 0xc67   : > { %v3610_v38 = vpop.eup %3609 }
 0xc68   : > { %1617 = vrot.lane.b32.xlu1 %v3610_v38, %s3861_s22  ;;  %v3612_v41 = vpop.eup %3611 }
 0xc69   : > { %v1729_v42 = vadd.f32 1.0, %v3612_v41  ;;  %v3614_v43 = vpop.eup %3613 }
 0xc6a   : > { %v1611_v45 = vadd.f32 1.0, %v3614_v43 }
 0xc6b   : > { %3615 = vrcp.f32 %v1729_v42 }
 0xc6c   : > { %3617 = vrcp.f32 %v1611_v45  ;;  %v2242_v45 = vld [vmem:[#allocation2 + $0xc] sm:$0x3] }
 0xc75   : > { %v3616_v46 = vpop.eup %3615 }
 0xc76   : > { %v3618_v49 = vpop.eup %3617  ;;  %v1733_v53 = vmul.f32 %v3616_v46, %v1449_v16 }
 0xc77   : > { %v1615_v56 = vmul.f32 %v3618_v49, %v1331_v19 }
 0xcd2   : > { %v1736_v47 = vpop.permute.xlu0 %1735 }
 0xcd3   : > { %v1738_v48 = vmul.f32 %v3616_v46, %v1736_v47 }
 0xcd5   : > { %1740 = vrot.lane.b32.xlu0 %v1738_v48, %s3862_s23 }
 0xcda   : > { %v1618_v50 = vpop.permute.xlu1 %1617 }
 0xcdb   : > { %v1620_v52 = vmul.f32 %v3618_v49, %v1618_v50 }
 0xcdd   : > { %1622 = vrot.lane.b32.xlu1 %v1620_v52, %s3862_s23 }
 0xd47   : > { %v1741_v54 = vpop.permute.xlu0 %1740 }
 0xd48   : > { %v1743_v55 = vadd.f32 %v1741_v54, %v1733_v53 }
 0xd4a   : > { %3619 = vtanh.f32 %v1743_v55 }
 0xd4f   : > { %v1623_v57 = vpop.permute.xlu1 %1622 }
 0xd50   : > { %v1625_v58 = vadd.f32 %v1623_v57, %v1615_v56 }
 0xd52   : > { %3621 = vtanh.f32 %v1625_v58 }
 0xd54   : > { %v3620_v59 = vpop.eup %3619 }
 0xd55   : > { %1746 = vrot.lane.b32.xlu0 %v3620_v59, %s3863_s18 }
 0xd5c   : > { %v3622_v60 = vpop.eup %3621 }
 0xd5d   : > { %1628 = vrot.lane.b32.xlu1 %v3622_v60, %s3863_s18 }
 0xdc7   : > { %v1747_v61 = vpop.permute.xlu0 %1746 }
 0xdc8   : > { %v1749_v62 = vmul.f32 %v3616_v46, %v1747_v61 }
 0xdca   : > { %1751 = vrot.lane.b32.xlu0 %v1749_v62, %s3864_s19 }
 0xdcf   : > { %v1629_v63 = vpop.permute.xlu1 %1628 }
 0xdd0   : > { %v4242_v0 = vmul.f32 %v3618_v49, %v1629_v63 }
 0xdd2   : > { %1827 = vrot.lane.b32.xlu1 %v4242_v0, %s3864_s19 }
 0xe3c   : > { %v1752_v1 = vpop.permute.xlu0 %1751 }
 0xe3d   : > { %3371 = vmatmul.mubr.msk.f32.vlgmr.msra.gmra.mrb[10].mxu0 %vm462_vm4, %v1752_v1  ;;  %3381 = vmatmul.mubr.msk.f32.vlgmr.msra.gmra.mrb[10].mxu1 %vm462_vm4, %v1752_v1 }
 0xe3e   : > { %3374 = vmatpush3.msra.mxu0 %v4130_v37  ;;  %3375 = vmatprep.mubr.msk.f32.mxu0 %vm3860_vm3, %v3859_v7 }
 0xe3f   : > { %3393 = vmatprep.subr.mxu0 %v3859_v7  ;;  %3384 = vmatpush3.msra.mxu1 %v4121_v33 }
 0xe40   : > { %3385 = vmatprep.mubr.msk.f32.mxu1 %vm3860_vm3, %v3859_v7  ;;  %3388 = vmatprep.subr.mxu1 %v3859_v7 }
 0xe44   : > { %v1828_v2 = vpop.permute.xlu1 %1827 }
 0xe45   : > { %3376 = vmatmul.mubr.msk.f32.vlgmr.msra.gmra.mrb[10].mxu0 %vm462_vm4, %v1828_v2 }
 0xe46   : > { %3394 = vmatpush3.msra.mxu0 %v4096_v9  ;;  %3395 = vmatprep.mubr.msk.f32.mxu0 %vm3860_vm3, %v3859_v7 }
 0xe47   : > { %3398 = vmatprep.subr.mxu0 %v3859_v7 }
 0xf10   : > { %v2015_v4 = vpop.f32.mrb[10].mxu1 }
 0xf11   : > { %v2019_v5 = vadd.f32 %v2015_v4, %v1948_v3  ;;  %v3382_v6 = vpop.f32.mrb[11].mxu1 }
 0xf13   : > { %3623 = vtanh.f32 %v2019_v5  ;;  %v3210_v15 = vmul.f32 -1.442695, %v2019_v5 }
 0xf18   : > { %v1897_v8 = vpop.f32.mrb[10].mxu0 }
 0xf19   : > { %v3445_v10 = vadd.f32 %v4150_v44, %v1897_v8  ;;  %v3377_v11 = vpop.f32.mrb[11].mxu0 }
 0xf1b   : > { %3625 = vtanh.f32 %v3445_v10  ;;  %v3208_v16 = vmul.f32 -1.442695, %v3445_v10 }
 0xf1c   : > { %3627 = vpow2.f32 %v3210_v15 }
 0xf1d   : > { %v3624_v12 = vpop.eup %3623  ;;  %3629 = vpow2.f32 %v3208_v16 }
 0xf1e   : > { %2029 = vrot.lane.b32.xlu0 %v3624_v12, %s3861_s22 }
 0xf25   : > { %v3626_v14 = vpop.eup %3625 }
 0xf26   : > { %1911 = vrot.lane.b32.xlu1 %v3626_v14, %s3861_s22  ;;  %v3628_v17 = vpop.eup %3627 }
 0xf27   : > { %v2023_v18 = vadd.f32 1.0, %v3628_v17  ;;  %v3630_v19 = vpop.eup %3629 }
 0xf28   : > { %v1905_v20 = vadd.f32 1.0, %v3630_v19 }
 0xf29   : > { %3631 = vrcp.f32 %v2023_v18 }
 0xf2a   : > { %3633 = vrcp.f32 %v1905_v20  ;;  %v2536_v20 = vld [vmem:[#allocation2 + $0xe] sm:$0x3] }
 0xf33   : > { %v3632_v21 = vpop.eup %3631 }
 0xf34   : > { %v3634_v24 = vpop.eup %3633  ;;  %v2027_v28 = vmul.f32 %v3632_v21, %v1743_v55 }
 0xf35   : > { %v1909_v31 = vmul.f32 %v3634_v24, %v1625_v58 }
 0xf90   : > { %v2030_v22 = vpop.permute.xlu0 %2029 }
 0xf91   : > { %v2032_v23 = vmul.f32 %v3632_v21, %v2030_v22 }
 0xf93   : > { %2034 = vrot.lane.b32.xlu0 %v2032_v23, %s3862_s23 }
 0xf98   : > { %v1912_v26 = vpop.permute.xlu1 %1911 }
 0xf99   : > { %v1914_v27 = vmul.f32 %v3634_v24, %v1912_v26 }
 0xf9b   : > { %1916 = vrot.lane.b32.xlu1 %v1914_v27, %s3862_s23 }
0x1005   : > { %v2035_v29 = vpop.permute.xlu0 %2034 }
0x1006   : > { %v2037_v30 = vadd.f32 %v2035_v29, %v2027_v28 }
0x1008   : > { %3635 = vtanh.f32 %v2037_v30 }
0x100d   : > { %v1917_v32 = vpop.permute.xlu1 %1916 }
0x100e   : > { %v1919_v34 = vadd.f32 %v1917_v32, %v1909_v31 }
0x1010   : > { %3637 = vtanh.f32 %v1919_v34 }
0x1012   : > { %v3636_v35 = vpop.eup %3635 }
0x1013   : > { %2040 = vrot.lane.b32.xlu0 %v3636_v35, %s3863_s18 }
0x101a   : > { %v3638_v36 = vpop.eup %3637 }
0x101b   : > { %1922 = vrot.lane.b32.xlu1 %v3638_v36, %s3863_s18 }
0x1085   : > { %v2041_v38 = vpop.permute.xlu0 %2040 }
0x1086   : > { %v2043_v39 = vmul.f32 %v3632_v21, %v2041_v38 }
0x1088   : > { %2045 = vrot.lane.b32.xlu0 %v2043_v39, %s3864_s19 }
0x108d   : > { %v1923_v40 = vpop.permute.xlu1 %1922 }
0x108e   : > { %v4269_v41 = vmul.f32 %v3634_v24, %v1923_v40 }
0x1090   : > { %2121 = vrot.lane.b32.xlu1 %v4269_v41, %s3864_s19 }
0x10fa   : > { %v2046_v42 = vpop.permute.xlu0 %2045 }
0x10fb   : > { %3386 = vmatmul.mubr.msk.f32.vlgmr.msra.gmra.mrb[12].mxu1 %vm462_vm4, %v2046_v42  ;;  %3396 = vmatmul.mubr.msk.f32.vlgmr.msra.gmra.mrb[12].mxu0 %vm462_vm4, %v2046_v42 }
0x10fc   : > { %3389 = vmatpush3.msra.mxu1 %v4130_v37  ;;  %3390 = vmatprep.mubr.msk.f32.mxu1 %vm3860_vm3, %v3859_v7 }
0x10fd   : > { %3408 = vmatprep.subr.mxu1 %v3859_v7  ;;  %3399 = vmatpush3.msra.mxu0 %v4121_v33 }
0x10fe   : > { %3400 = vmatprep.mubr.msk.f32.mxu0 %vm3860_vm3, %v3859_v7  ;;  %3403 = vmatprep.subr.mxu0 %v3859_v7 }
0x1102   : > { %v2122_v43 = vpop.permute.xlu1 %2121 }
0x1103   : > { %3391 = vmatmul.mubr.msk.f32.vlgmr.msra.gmra.mrb[12].mxu1 %vm462_vm4, %v2122_v43 }
0x1104   : > { %3409 = vmatpush3.msra.mxu1 %v4096_v9  ;;  %3410 = vmatprep.mubr.msk.f32.mxu1 %vm3860_vm3, %v3859_v7 }
0x1105   : > { %3413 = vmatprep.subr.mxu1 %v3859_v7 }
0x11ce   : > { %v2309_v46 = vpop.f32.mrb[12].mxu0 }
0x11cf   : > { %v2313_v47 = vadd.f32 %v2309_v46, %v2242_v45  ;;  %v3397_v48 = vpop.f32.mrb[13].mxu0 }
0x11d1   : > { %3639 = vtanh.f32 %v2313_v47  ;;  %v3215_v9 = vmul.f32 -1.442695, %v2313_v47 }
0x11d6   : > { %v2191_v49 = vpop.f32.mrb[12].mxu1 }
0x11d7   : > { %v3446_v50 = vadd.f32 %v4150_v44, %v2191_v49  ;;  %v3392_v52 = vpop.f32.mrb[13].mxu1 }
0x11d9   : > { %3641 = vtanh.f32 %v3446_v50  ;;  %v3213_v55 = vmul.f32 -1.442695, %v3446_v50 }
0x11da   : > { %3643 = vpow2.f32 %v3215_v9 }
0x11db   : > { %v3640_v53 = vpop.eup %3639  ;;  %3645 = vpow2.f32 %v3213_v55 }
0x11dc   : > { %2323 = vrot.lane.b32.xlu0 %v3640_v53, %s3861_s22 }
0x11e3   : > { %v3642_v54 = vpop.eup %3641 }
0x11e4   : > { %2205 = vrot.lane.b32.xlu1 %v3642_v54, %s3861_s22  ;;  %v3644_v56 = vpop.eup %3643 }
0x11e5   : > { %v2317_v57 = vadd.f32 1.0, %v3644_v56  ;;  %v3646_v58 = vpop.eup %3645 }
0x11e6   : > { %v2199_v59 = vadd.f32 1.0, %v3646_v58 }
0x11e7   : > { %3647 = vrcp.f32 %v2317_v57 }
0x11e8   : > { %3649 = vrcp.f32 %v2199_v59 }
0x11f1   : > { %v3648_v60 = vpop.eup %3647 }
0x11f2   : > { %v3650_v63 = vpop.eup %3649  ;;  %v2321_v3 = vmul.f32 %v3648_v60, %v2037_v30 }
0x11f3   : > { %v2203_v6 = vmul.f32 %v3650_v63, %v1919_v34 }
0x124e   : > { %v2324_v61 = vpop.permute.xlu0 %2323 }
0x124f   : > { %v2326_v62 = vmul.f32 %v3648_v60, %v2324_v61 }
0x1251   : > { %2328 = vrot.lane.b32.xlu0 %v2326_v62, %s3862_s23 }
0x1256   : > { %v2206_v1 = vpop.permute.xlu1 %2205 }
0x1257   : > { %v2208_v2 = vmul.f32 %v3650_v63, %v2206_v1 }
0x1259   : > { %2210 = vrot.lane.b32.xlu1 %v2208_v2, %s3862_s23 }
0x12c3   : > { %v2329_v4 = vpop.permute.xlu0 %2328 }
0x12c4   : > { %v2331_v5 = vadd.f32 %v2329_v4, %v2321_v3 }
0x12c6   : > { %3651 = vtanh.f32 %v2331_v5 }
0x12cb   : > { %v2211_v8 = vpop.permute.xlu1 %2210 }
0x12cc   : > { %v2213_v10 = vadd.f32 %v2211_v8, %v2203_v6 }
0x12ce   : > { %3653 = vtanh.f32 %v2213_v10 }
0x12d0   : > { %v3652_v11 = vpop.eup %3651 }
0x12d1   : > { %2334 = vrot.lane.b32.xlu0 %v3652_v11, %s3863_s18 }
0x12d8   : > { %v3654_v12 = vpop.eup %3653 }
0x12d9   : > { %2216 = vrot.lane.b32.xlu1 %v3654_v12, %s3863_s18 }
0x1343   : > { %v2335_v14 = vpop.permute.xlu0 %2334 }
0x1344   : > { %v2337_v15 = vmul.f32 %v3648_v60, %v2335_v14  ;;  %v1044_v14 = vsel %vm749_vm6, %v4188_v51, -inf }
0x1346   : > { %2339 = vrot.lane.b32.xlu0 %v2337_v15, %s3864_s19  ;;  %v1338_v15 = vsel %vm749_vm6, %v4215_v25, -inf }
0x134b   : > { %v2217_v16 = vpop.permute.xlu1 %2216 }
0x134c   : > { %v4296_v17 = vmul.f32 %v3650_v63, %v2217_v16  ;;  %v1926_v16 = vsel %vm749_vm6, %v4269_v41, -inf }
0x134e   : > { %2415 = vrot.lane.b32.xlu1 %v4296_v17, %s3864_s19  ;;  %v2220_v6 = vsel %vm749_vm6, %v4296_v17, -inf }
0x13b8   : > { %v2340_v18 = vpop.permute.xlu0 %2339 }
0x13b9   : > { %3401 = vmatmul.mubr.msk.f32.vlgmr.msra.gmra.mrb[14].mxu0 %vm462_vm4, %v2340_v18  ;;  %3411 = vmatmul.mubr.msk.f32.vlgmr.msra.gmra.mrb[14].mxu1 %vm462_vm4, %v2340_v18 }
0x13ba   : > { %3404 = vmatpush3.msra.mxu0 %v4130_v37  ;;  %3405 = vmatprep.mubr.msk.f32.mxu0 %vm3860_vm3, %v3859_v7 }
0x13bb   : > { %3414 = vmatpush3.msra.mxu1 %v4121_v33  ;;  %3415 = vmatprep.mubr.msk.f32.mxu1 %vm3860_vm3, %v3859_v7 }
0x13bc   : > { %3418 = vmatprep.subr.mxu1 %v3859_v7  ;;  %3423 = vmatprep.subr.mxu0 %v3859_v7 }
0x13c0   : > { %v2416_v19 = vpop.permute.xlu1 %2415 }
0x13c1   : > { %3406 = vmatmul.mubr.msk.f32.vlgmr.msra.gmra.mrb[14].mxu0 %vm462_vm4, %v2416_v19 }
0x13c2   : > { %3425 = vmatprep.mubr.msk.f32.mxu0 %vm3860_vm3, %v3859_v7 }
0x148c   : > { %v2603_v21 = vpop.f32.mrb[14].mxu1 }
0x148d   : > { %v2607_v22 = vadd.f32 %v2603_v21, %v2536_v20  ;;  %v3412_v23 = vpop.f32.mrb[15].mxu1 }
0x148f   : > { %3655 = vtanh.f32 %v2607_v22  ;;  %v3220_v29 = vmul.f32 -1.442695, %v2607_v22 }
0x1494   : > { %v2485_v24 = vpop.f32.mrb[14].mxu0 }
0x1495   : > { %v3447_v33 = vadd.f32 %v4150_v44, %v2485_v24  ;;  %v3407_v26 = vpop.f32.mrb[15].mxu0 }
0x1497   : > { %3657 = vtanh.f32 %v3447_v33  ;;  %v3218_v30 = vmul.f32 -1.442695, %v3447_v33 }
0x1498   : > { %3659 = vpow2.f32 %v3220_v29 }
0x1499   : > { %v3656_v27 = vpop.eup %3655  ;;  %3661 = vpow2.f32 %v3218_v30 }
0x149a   : > { %2617 = vrot.lane.b32.xlu0 %v3656_v27, %s3861_s22 }
0x14a1   : > { %v3658_v28 = vpop.eup %3657 }
0x14a2   : > { %2499 = vrot.lane.b32.xlu1 %v3658_v28, %s3861_s22  ;;  %v3660_v31 = vpop.eup %3659 }
0x14a3   : > { %v2611_v32 = vadd.f32 1.0, %v3660_v31  ;;  %v3662_v34 = vpop.eup %3661 }
0x14a4   : > { %v2493_v35 = vadd.f32 1.0, %v3662_v34 }
0x14a5   : > { %3663 = vrcp.f32 %v2611_v32 }
0x14a6   : > { %3665 = vrcp.f32 %v2493_v35 }
0x14af   : > { %v3664_v36 = vpop.eup %3663 }
0x14b0   : > { %v3666_v40 = vpop.eup %3665  ;;  %v2615_v45 = vmul.f32 %v3664_v36, %v2331_v5  ;;  %v750_v5 = vsel %vm749_vm6, %v4161_v13, -inf }
0x14b1   : > { %v2497_v48 = vmul.f32 %v3666_v40, %v2213_v10 }
0x150c   : > { %v2618_v38 = vpop.permute.xlu0 %2617 }
0x150d   : > { %v2620_v39 = vmul.f32 %v3664_v36, %v2618_v38 }
0x150f   : > { %2622 = vrot.lane.b32.xlu0 %v2620_v39, %s3862_s23 }
0x1514   : > { %v2500_v42 = vpop.permute.xlu1 %2499 }
0x1515   : > { %v2502_v43 = vmul.f32 %v3666_v40, %v2500_v42 }
0x1517   : > { %2504 = vrot.lane.b32.xlu1 %v2502_v43, %s3862_s23 }
0x1581   : > { %v2623_v46 = vpop.permute.xlu0 %2622 }
0x1582   : > { %v4318_v47 = vadd.f32 %v2623_v46, %v2615_v45 }
0x1584   : > { %3667 = vtanh.f32 %v4318_v47 }
0x1589   : > { %v2505_v49 = vpop.permute.xlu1 %2504 }
0x158a   : > { %v2507_v50 = vadd.f32 %v2505_v49, %v2497_v48 }
0x158c   : > { %3669 = vtanh.f32 %v2507_v50 }
0x158e   : > { %v3668_v52 = vpop.eup %3667 }
0x158f   : > { %2628 = vrot.lane.b32.xlu0 %v3668_v52, %s3863_s18 }
0x1596   : > { %v3670_v53 = vpop.eup %3669 }
0x1597   : > { %2510 = vrot.lane.b32.xlu1 %v3670_v53, %s3863_s18 }
0x1601   : > { %v2629_v54 = vpop.permute.xlu0 %2628 }
0x1602   : > { %v2631_v9 = vmul.f32 %v3664_v36, %v2629_v54 }
0x1604   : > { %2633 = vrot.lane.b32.xlu0 %v2631_v9, %s3864_s19 }
0x1609   : > { %v2511_v55 = vpop.permute.xlu1 %2510 }
0x160a   : > { %v4324_v56 = vmul.f32 %v3666_v40, %v2511_v55 }
0x160c   : > { %2709 = vrot.lane.b32.xlu1 %v4324_v56, %s3864_s19  ;;  %v2514_v18 = vsel %vm749_vm6, %v4324_v56, -inf }
0x1676   : > { %v2634_v57 = vpop.permute.xlu0 %2633 }
0x1677   : > { %2830 = vst.msk [vmem:[#allocation4] sm:$0x3] %vm760_vm5, %v2634_v57  ;;  %3416 = vmatmul.mubr.msk.f32.vlgmr.msra.gmra.mrb[16].mxu1 %vm462_vm4, %v2634_v57 }
0x1678   : > { %3419 = vmatpush3.msra.mxu1 %v4130_v37  ;;  %3420 = vmatprep.mubr.msk.f32.mxu1 %vm3860_vm3, %v3859_v7 }
0x167e   : > { %v2710_v58 = vpop.permute.xlu1 %2709 }
0x167f   : > { %3421 = vmatmul.mubr.msk.f32.vlgmr.msra.gmra.mrb[16].mxu1 %vm462_vm4, %v2710_v58 }
0x1752   : > { %v2779_v59 = vpop.f32.mrb[16].mxu1 }
0x1753   : > { %v3448_v60 = vadd.f32 %v4150_v44, %v2779_v59  ;;  %v3422_v61 = vpop.f32.mrb[17].mxu1  ;;  %v1632_v44 = vsel %vm749_vm6, %v4242_v0, -inf }
0x1755   : > { %3671 = vtanh.f32 %v3448_v60  ;;  %v3223_v63 = vmul.f32 -1.442695, %v3448_v60 }
0x1757   : > { %3673 = vpow2.f32 %v3223_v63 }
0x175f   : > { %v3672_v62 = vpop.eup %3671 }
0x1760   : > { %2793 = vrot.lane.b32.xlu0 %v3672_v62, %s3861_s22 }
0x1761   : > { %v3674_v1 = vpop.eup %3673 }
0x1762   : > { %v2787_v2 = vadd.f32 1.0, %v3674_v1 }
0x1764   : > { %3675 = vrcp.f32 %v2787_v2 }
0x176e   : > { %v3676_v37 = vpop.eup %3675 }
0x176f   : > { %v2791_v8 = vmul.f32 %v3676_v37, %v2507_v50 }
0x17d2   : > { %v2794_v3 = vpop.permute.xlu0 %2793 }
0x17d3   : > { %v2796_v4 = vmul.f32 %v3676_v37, %v2794_v3 }
0x17d5   : > { %2798 = vrot.lane.b32.xlu1 %v2796_v4, %s3862_s23 }
0x17f9   : > { %751 = vmax.xlane.f32.xlu1 %v750_v5 }
0x17fd   : > { %1633 = vmax.xlane.f32.xlu1 %v1632_v44 }
0x1801   : > { %2221 = vmax.xlane.f32.xlu1 %v2220_v6 }
0x1847   : > { %v2799_v10 = vpop.permute.xlu1 %2798 }
0x1848   : > { %v4343_v11 = vadd.f32 %v2799_v10, %v2791_v8 }
0x184a   : > { %3677 = vtanh.f32 %v4343_v11 }
0x1854   : > { %v3678_v12 = vpop.eup %3677 }
0x1855   : > { %2804 = vrot.lane.b32.xlu0 %v3678_v12, %s3863_s18 }
0x1874   : > { %1045 = vmax.xlane.f32.xlu0 %v1044_v14 }
0x1878   : > { %1339 = vmax.xlane.f32.xlu0 %v1338_v15 }
0x187c   : > { %1927 = vmax.xlane.f32.xlu0 %v1926_v16 }
0x1880   : > { %2515 = vmax.xlane.f32.xlu0 %v2514_v18 }
0x1886   : > { %v752_v19 = vpop.xlane.xlu1 %751 }
0x1887   : > { %v753_v20 = vsub.f32 %v4161_v13, %v752_v19 }
0x1889   : > { %v754_v21 = vmul.f32 1.442695, %v753_v20 }
0x188a   : > { %v1634_v22 = vpop.xlane.xlu1 %1633 }
0x188b   : > { %3679 = vpow2.f32 %v754_v21  ;;  %v1635_v23 = vsub.f32 %v4242_v0, %v1634_v22 }
0x188d   : > { %v1636_v24 = vmul.f32 1.442695, %v1635_v23 }
0x188e   : > { %v2222_v33 = vpop.xlane.xlu1 %2221 }
0x188f   : > { %3681 = vpow2.f32 %v1636_v24  ;;  %v2223_v26 = vsub.f32 %v4296_v17, %v2222_v33 }
0x1891   : > { %v2224_v27 = vmul.f32 1.442695, %v2223_v26 }
0x1893   : > { %3683 = vpow2.f32 %v2224_v27 }
0x1895   : > { %v4358_v28 = vpop.eup %3679 }
0x1896   : > { %757 = vrot.lane.b32.xlu0 %v4358_v28, %s3864_s19 }
0x1899   : > { %v4362_v29 = vpop.eup %3681 }
0x189a   : > { %1639 = vrot.lane.b32.xlu0 %v4362_v29, %s3864_s19 }
0x189d   : > { %v4366_v13 = vpop.eup %3683 }
0x189e   : > { %2227 = vrot.lane.b32.xlu0 %v4366_v13, %s3864_s19 }
0x18c7   : > { %v2805_v0 = vpop.permute.xlu0 %2804 }
0x18c8   : > { %v4370_v30 = vmul.f32 %v3676_v37, %v2805_v0 }
0x18ca   : > { %v2808_v17 = vsel %vm749_vm6, %v4370_v30, -inf }
0x18cb   : > { %2809 = vmax.xlane.f32.xlu1 %v2808_v17 }
0x1901   : > { %v1046_v31 = vpop.xlane.xlu0 %1045 }
0x1902   : > { %v1047_v32 = vsub.f32 %v4188_v51, %v1046_v31 }
0x1904   : > { %v1048_v34 = vmul.f32 1.442695, %v1047_v32  ;;  %v2847_v32 = vld [vmem:[%s4074_s13] ss:$2 sm:$0xff] }
0x1905   : > { %v1340_v35 = vpop.xlane.xlu0 %1339  ;;  %3424 = vmatpush3.msra.mxu0 %v2847_v32 }
0x1906   : > { %3685 = vpow2.f32 %v1048_v34  ;;  %v1341_v36 = vsub.f32 %v4215_v25, %v1340_v35  ;;  %3428 = vmatprep.subr.mxu0 %v3859_v7 }
0x1908   : > { %v1342_v38 = vmul.f32 1.442695, %v1341_v36 }
0x1909   : > { %v1928_v39 = vpop.xlane.xlu0 %1927 }
0x190a   : > { %3687 = vpow2.f32 %v1342_v38  ;;  %v1929_v40 = vsub.f32 %v4269_v41, %v1928_v39 }
0x190c   : > { %v1930_v42 = vmul.f32 1.442695, %v1929_v40 }
0x190d   : > { %v2516_v43 = vpop.xlane.xlu0 %2515 }
0x190e   : > { %3689 = vpow2.f32 %v1930_v42  ;;  %v2517_v45 = vsub.f32 %v4324_v56, %v2516_v43 }
0x1910   : > { %v4378_v46 = vpop.eup %3685  ;;  %v2518_v48 = vmul.f32 1.442695, %v2517_v45 }
0x1911   : > { %1051 = vrot.lane.b32.xlu1 %v4378_v46, %s3864_s19  ;;  %v758_v49 = vpop.permute.xlu0 %757 }
0x1912   : > { %3691 = vpow2.f32 %v2518_v48  ;;  %v761_v52 = vsel %vm760_vm5, %v758_v49, 0.0  ;;  %v2880_v49 = vld [vmem:[%s4482_s7] sm:$0x7f] }
0x1914   : > { %v4382_v51 = vpop.eup %3687 }
0x1915   : > { %1345 = vrot.lane.b32.xlu1 %v4382_v51, %s3864_s19  ;;  %v1640_v50 = vpop.permute.xlu0 %1639 }
0x1916   : > { %v1642_v53 = vsel %vm760_vm5, %v1640_v50, 0.0 }
0x1918   : > { %v4386_v25 = vpop.eup %3689 }
0x1919   : > { %1933 = vrot.lane.b32.xlu1 %v4386_v25, %s3864_s19  ;;  %v2228_v54 = vpop.permute.xlu0 %2227 }
0x191a   : > { %v2230_v9 = vsel %vm760_vm5, %v2228_v54, 0.0  ;;  %v3226_v54 = vld [vmem:[%s4482_s7 + $0x8] sm:$0x7f] }
0x191c   : > { %v4390_v41 = vpop.eup %3691 }
0x191d   : > { %2521 = vrot.lane.b32.xlu1 %v4390_v41, %s3864_s19 }
0x1941   : > { %762 = vadd.xlane.f32.xlu1 %v761_v52 }
0x1945   : > { %1643 = vadd.xlane.f32.xlu1 %v1642_v53 }
0x1949   : > { %2231 = vadd.xlane.f32.xlu1 %v2230_v9 }
0x1958   : > { %v2810_v55 = vpop.xlane.xlu1 %2809 }
0x1959   : > { %v2811_v56 = vsub.f32 %v4370_v30, %v2810_v55 }
0x195b   : > { %v2812_v57 = vmul.f32 1.442695, %v2811_v56 }
0x195d   : > { %3693 = vpow2.f32 %v2812_v57 }
0x1967   : > { %v4398_v58 = vpop.eup %3693 }
0x1968   : > { %2815 = vrot.lane.b32.xlu0 %v4398_v58, %s3864_s19 }
0x1983   : > { %v1052_v59 = vpop.permute.xlu1 %1051 }
0x1984   : > { %v1054_v60 = vsel %vm760_vm5, %v1052_v59, 0.0 }
0x1987   : > { %1055 = vadd.xlane.f32.xlu0 %v1054_v60  ;;  %v1346_v61 = vpop.permute.xlu1 %1345 }
0x1988   : > { %v1348_v62 = vsel %vm760_vm5, %v1346_v61, 0.0 }
0x198b   : > { %1349 = vadd.xlane.f32.xlu0 %v1348_v62  ;;  %v1934_v63 = vpop.permute.xlu1 %1933 }
0x198c   : > { %v1936_v1 = vsel %vm760_vm5, %v1934_v63, 0.0 }
0x198f   : > { %1937 = vadd.xlane.f32.xlu0 %v1936_v1  ;;  %v2522_v2 = vpop.permute.xlu1 %2521 }
0x1990   : > { %v2524_v37 = vsel %vm760_vm5, %v2522_v2, 0.0 }
0x1993   : > { %2525 = vadd.xlane.f32.xlu0 %v2524_v37 }
0x19ce   : > { %v763_v3 = vpop.xlane.xlu1 %762 }
0x19cf   : > { %3695 = vrcp.f32 %v763_v3 }
0x19d2   : > { %v1644_v4 = vpop.xlane.xlu1 %1643 }
0x19d3   : > { %3697 = vrcp.f32 %v1644_v4 }
0x19d6   : > { %v2232_v5 = vpop.xlane.xlu1 %2231 }
0x19d7   : > { %3699 = vrcp.f32 %v2232_v5 }
0x19d9   : > { %v3696_v44 = vpop.eup %3695 }
0x19da   : > { %v2816_v6 = vpop.permute.xlu0 %2815  ;;  %v765_v8 = vmul.f32 %v3696_v44, %v4358_v28 }
0x19db   : > { %v2818_v10 = vsel %vm760_vm5, %v2816_v6, 0.0 }
0x19dc   : > { %767 = vrot.lane.b32.xlu0 %v765_v8, %s3864_s19  ;;  %2819 = vadd.xlane.f32.xlu1 %v2818_v10 }
0x19dd   : > { %v3698_v12 = vpop.eup %3697 }
0x19de   : > { %v1646_v14 = vmul.f32 %v3698_v12, %v4362_v29 }
0x19e0   : > { %1648 = vrot.lane.b32.xlu0 %v1646_v14, %s3864_s19 }
0x19e1   : > { %v3700_v15 = vpop.eup %3699 }
0x19e2   : > { %v2234_v16 = vmul.f32 %v3700_v15, %v4366_v13 }
0x19e4   : > { %2236 = vrot.lane.b32.xlu0 %v2234_v16, %s3864_s19 }
0x1a14   : > { %v1056_v18 = vpop.xlane.xlu0 %1055 }
0x1a15   : > { %3701 = vrcp.f32 %v1056_v18 }
0x1a18   : > { %v1350_v19 = vpop.xlane.xlu0 %1349 }
0x1a19   : > { %3703 = vrcp.f32 %v1350_v19 }
0x1a1c   : > { %v1938_v20 = vpop.xlane.xlu0 %1937 }
0x1a1d   : > { %3705 = vrcp.f32 %v1938_v20 }
0x1a1f   : > { %v3702_v21 = vpop.eup %3701 }
0x1a20   : > { %v2526_v22 = vpop.xlane.xlu0 %2525  ;;  %v1058_v23 = vmul.f32 %v3702_v21, %v4378_v46 }
0x1a21   : > { %3707 = vrcp.f32 %v2526_v22 }
0x1a22   : > { %1060 = vrot.lane.b32.xlu1 %v1058_v23, %s3864_s19 }
0x1a23   : > { %v3704_v24 = vpop.eup %3703 }
0x1a24   : > { %v1352_v33 = vmul.f32 %v3704_v24, %v4382_v51 }
0x1a26   : > { %1354 = vrot.lane.b32.xlu1 %v1352_v33, %s3864_s19 }
0x1a27   : > { %v3706_v26 = vpop.eup %3705 }
0x1a28   : > { %v1940_v27 = vmul.f32 %v3706_v26, %v4386_v25  ;;  %v3225_v25 = vld [vmem:[%s4074_s13 + $0x1] ss:$2 sm:$0xff] }
0x1a2a   : > { %1942 = vrot.lane.b32.xlu1 %v1940_v27, %s3864_s19 }
0x1a2b   : > { %v3708_v28 = vpop.eup %3707 }
0x1a2c   : > { %v2528_v29 = vmul.f32 %v3708_v28, %v4390_v41 }
0x1a2e   : > { %2530 = vrot.lane.b32.xlu1 %v2528_v29, %s3864_s19 }
0x1a32   : > { %2832 = vrot.lane.b32.xlu1 %v4318_v47, %s3865_s10 }
0x1a36   : > { %2842 = vrot.lane.b32.xlu1 %v4343_v11, %s3865_s10 }
0x1a4e   : > { %v768_v13 = vpop.permute.xlu0 %767 }
0x1a4f   : > { %770 = vst.msk [vmem:[#allocation3] sm:$0x3] %vm760_vm5, %v768_v13 }
0x1a52   : > { %v1649_v0 = vpop.permute.xlu0 %1648 }
0x1a53   : > { %1652 = vst.msk [vmem:[#allocation3 + $0x6] sm:$0x3] %vm760_vm5, %v1649_v0 }
0x1a56   : > { %v2237_v17 = vpop.permute.xlu0 %2236 }
0x1a57   : > { %2240 = vst.msk [vmem:[#allocation3 + $0xa] sm:$0x3] %vm760_vm5, %v2237_v17 }
0x1a69   : > { %v2820_v31 = vpop.xlane.xlu1 %2819 }
0x1a6a   : > { %3709 = vrcp.f32 %v2820_v31 }
0x1a74   : > { %v3710_v34 = vpop.eup %3709 }
0x1a75   : > { %v2822_v47 = vmul.f32 %v3710_v34, %v4398_v58 }
0x1a77   : > { %2824 = vrot.lane.b32.xlu0 %v2822_v47, %s3864_s19 }
0x1a7b   : > { %2837 = vrot.lane.b32.xlu0 %v4370_v30, %s3864_s19 }
0x1a94   : > { %v1061_v11 = vpop.permute.xlu1 %1060 }
0x1a95   : > { %1064 = vst.msk [vmem:[#allocation3 + $0x2] sm:$0x3] %vm760_vm5, %v1061_v11 }
0x1a98   : > { %v1355_v35 = vpop.permute.xlu1 %1354 }
0x1a99   : > { %1358 = vst.msk [vmem:[#allocation3 + $0x4] sm:$0x3] %vm760_vm5, %v1355_v35 }
0x1a9c   : > { %v1943_v36 = vpop.permute.xlu1 %1942 }
0x1a9d   : > { %1946 = vst.msk [vmem:[#allocation3 + $0x8] sm:$0x3] %vm760_vm5, %v1943_v36 }
0x1aa0   : > { %v2531_v38 = vpop.permute.xlu1 %2530 }
0x1aa1   : > { %2534 = vst.msk [vmem:[#allocation3 + $0xc] sm:$0x3] %vm760_vm5, %v2531_v38 }
0x1aa4   : > { %v2833_v39 = vpop.permute.xlu1 %2832 }
0x1aa5   : > { %2835 = vst.msk [vmem:[#allocation5] sm:$0x3] %vm760_vm5, %v2833_v39 }
0x1aa8   : > { %v2843_v40 = vpop.permute.xlu1 %2842 }
0x1aa9   : > { %2845 = vst.msk [vmem:[#allocation7] sm:$0x3] %vm760_vm5, %v2843_v40 }
0x1ae9   : > { %v2825_v30 = vpop.permute.xlu0 %2824 }
0x1aea   : > { %2828 = vst.msk [vmem:[#allocation3 + $0xe] sm:$0x3] %vm760_vm5, %v2825_v30 }
0x1aed   : > { %v2838_v42 = vpop.permute.xlu0 %2837 }
0x1aee   : > { %2840 = vst.msk [vmem:[#allocation6] sm:$0x3] %vm760_vm5, %v2838_v42 }
0x1af1   : > { %v2959_v43 = vld [vmem:[#allocation3 + $0x1] ss:$2 sm:$0xff]  ;;  %v2846_v45 = vld [vmem:[#allocation3] ss:$2 sm:$0xff] }
0x1af2   : > { %2962 = vxpose.xlu1.b32.start.end [1/1] (short) (narrow) %v2959_v43, 8  ;;  %2848 = vxpose.xlu0.b32.start.end [1/1] (short) (narrow) %v2846_v45, 8 }
0x1b72   : > { %v2864_v46 = vpop.trf.xlu0  ;;  %v2978_v48 = vpop.trf.xlu1 }
0x1b73   : > { %v2882_v51 = vrot.slane %v2864_v46, 1  ;;  %v2997_v41 = vrot.slane %v2978_v48, 1 }
0x1b75   : > { %3426 = vmatmul.mubr.msk.f32.vlgmr.msra.gmra.mrb[16].mxu0 %vm462_vm4, %v2882_v51 }
0x1b76   : > { %3429 = vmatpush3.msra.mxu0 %v3225_v25  ;;  %3430 = vmatprep.mubr.msk.f32.mxu0 %vm3860_vm3, %v3859_v7 }
0x1b79   : > { %3431 = vmatmul.mubr.msk.f32.vlgmr.msra.gmra.mrb[18].mxu0 %vm462_vm4, %v2997_v41 }
0x1c48   : > { %v2951_v50 = vpop.f32.mrb[16].mxu0 }
0x1c49   : > { %v2955_v52 = vadd.f32 %v2951_v50, %v2880_v49  ;;  %v3427_v53 = vpop.f32.mrb[17].mxu0 }
0x1c4b   : > { %2957 = vst.msk [vmem:[%s4482_s7] sm:$0x7f] %vm2956_vm7, %v2955_v52 }
0x1c4c   : > { %v3066_v9 = vpop.f32.mrb[18].mxu0 }
0x1c4d   : > { %v3070_v7 = vadd.f32 %v3226_v54, %v3066_v9  ;;  %v3432_v55 = vpop.f32.mrb[19].mxu0 }
0x1c4f   : > { %3228 = vst.msk [vmem:[%s4482_s7 + $0x8] sm:$0x7f] %vm2956_vm7, %v3070_v7 }
0x1c50 PF: > { %s21_s29 = sadd.s32 1, %s3851_s29   ;;  %s4495_s24 = smov %s3835_s25 }
0x1c51   : > { %p18_p9 = scmp.ge.s32.totalorder %s21_s29, 4   ;;  %s4496_s25 = smov %s3839_s26 }
0x1c52   : > { %s4497_s26 = smov %s4025_s20  ;;  %s4498_s27 = smov %s3847_s28 }
0x1c53   : > { %s4499_s28 = smov %s4501_s14  ;;  %20 = sbr.rel (!%p18_p9) target bundleno = 5 (0x5), region = 117 }
0x1c5a   :  { %3094 = vsyncpa [#allocation9], 1 }
0x1c5b   :  { %3096 = vsyncpa [#allocation9 + $0x1], 1 }
0x1c5c   :  { %3097 = vsyncpa [#allocation11], 1 }

</bundles_post_ra>
